<compile_context>
chip_gen: v6e
topology: v6e:2x2x1
jax: 0.10.0
libtpu: 0.0.40
codegen_flags: <defaults>
</compile_context>

<pallas_src>
import jax
import jax.numpy as jnp
from jax.experimental import pallas as pl
from jax.experimental.pallas import tpu as pltpu


def highway_kernel(x_ref, w_ref, b_ref, o_ref):
    # x_ref: (TM, H)      f32 batch tile
    # w_ref: (L, H, 2H)   bf16 fused weights: [:, :, :H] relu branch, [:, :, H:] gate
    # b_ref: (L, 1, 2H)   f32 fused biases (same split)
    # o_ref: (TM, H)
    H = x_ref.shape[1]
    num_layers = w_ref.shape[0]
    out = x_ref[...].astype(jnp.float32)
    # num_layers is small & static -> unrolled Python loop keeps the single
    # fused matmul per layer on the MXU, gate math on the VPU/EUP.
    for l in range(num_layers):
        y = jnp.dot(out.astype(jnp.bfloat16), w_ref[l],
                    preferred_element_type=jnp.float32) + b_ref[l]
        h = jnp.maximum(y[:, :H], 0.0)          # ReLU branch
        g = jax.nn.sigmoid(y[:, H:])            # gate branch (EUP)
        out = out + g * (h - out)               # == h*g + out*(1-g)
    o_ref[...] = out.astype(o_ref.dtype)


def fuse_weights(w_relu, b_relu, w_sig, b_sig):
    """Concatenate relu/gate branches along the output axis; weights -> bf16."""
    L, H, _ = w_relu.shape
    w_cat = jnp.concatenate([w_relu, w_sig], axis=-1).astype(jnp.bfloat16)  # (L,H,2H)
    b_cat = jnp.concatenate([b_relu, b_sig], axis=-1).reshape(L, 1, 2 * H)  # (L,1,2H) f32
    return w_cat, b_cat


def highway_network(x, w_relu, b_relu, w_sig, b_sig, *, tile_m=128):
    """x: (B, H) f32.  w_*: (L, H, H) in (in x out) layout.  b_*: (L, H)."""
    B, H = x.shape
    L = w_relu.shape[0]
    w_cat, b_cat = fuse_weights(w_relu, b_relu, w_sig, b_sig)

    # Don't tile beyond the (8-row padded) batch; pad batch to a tile multiple.
    tile_m = min(tile_m, max(8, -(-B // 8) * 8))
    pad = (-B) % tile_m
    x_p = jnp.pad(x, ((0, pad), (0, 0))) if pad else x
    Bp = B + pad
    grid = (Bp // tile_m,)

    # Weight/bias blocks have a constant index_map -> resident across the grid.
    # (At H=128, L=4 the bf16 fused weights are only ~512 KiB; for much larger H
    #  consider pl.Buffered(1) on these specs and a larger vmem_limit_bytes.)
    w_spec = pl.BlockSpec((L, H, 2 * H), lambda i: (0, 0, 0))
    b_spec = pl.BlockSpec((L, 1, 2 * H), lambda i: (0, 0, 0))

    out = pl.pallas_call(
        highway_kernel,
        out_shape=jax.ShapeDtypeStruct((Bp, H), x.dtype),
        grid_spec=pltpu.PrefetchScalarGridSpec(
            num_scalar_prefetch=0,
            grid=grid,
            in_specs=[
                pl.BlockSpec((tile_m, H), lambda i: (i, 0)),
                w_spec,
                b_spec,
            ],
            out_specs=pl.BlockSpec((tile_m, H), lambda i: (i, 0)),
        ),
        compiler_params=pltpu.CompilerParams(
            dimension_semantics=("parallel",),
            vmem_limit_bytes=32 * 1024 * 1024,
        ),
    )(x_p, w_cat, b_cat)
    return out[:B]


def highway_reference_kernel_numerics(x, w_cat, b_cat):
    """Pure-JAX reference that mimics the kernel's bf16-matmul / f32-accumulate."""
    H = x.shape[1]
    out = x.astype(jnp.float32)
    for l in range(w_cat.shape[0]):
        y = jnp.dot(out.astype(jnp.bfloat16), w_cat[l],
                    preferred_element_type=jnp.float32) + b_cat[l]
        h = jnp.maximum(y[:, :H], 0.0)
        g = jax.nn.sigmoid(y[:, H:])
        out = out + g * (h - out)
    return out


def highway_reference_f32(x, w_relu, b_relu, w_sig, b_sig):
    """Pure-f32 reference matching the PyTorch module exactly."""
    out = x.astype(jnp.float32)
    for l in range(w_relu.shape[0]):
        h = jnp.maximum(out @ w_relu[l] + b_relu[l], 0.0)
        g = jax.nn.sigmoid(out @ w_sig[l] + b_sig[l])
        out = h * g + out * (1.0 - g)
    return out.astype(x.dtype)


if __name__ == "__main__":
    hidden = 128          # module default output_hidden=128
    num_layers = 4        # module default num_layers=4
    batch = 256           # 2 grid steps at tile_m=128 (keeps both v7x TCs busy)

    key = jax.random.PRNGKey(0)
    kx, kwr, kbr, kws, kbs = jax.random.split(key, 5)

    # Deterministic init mimicking nn.Linear: U(-1/sqrt(in), 1/sqrt(in)).
    bound = 1.0 / jnp.sqrt(jnp.float32(hidden))
    x = jax.random.normal(kx, (batch, hidden), dtype=jnp.float32)
    w_relu = jax.random.uniform(kwr, (num_layers, hidden, hidden),
                                minval=-bound, maxval=bound, dtype=jnp.float32)
    b_relu = jax.random.uniform(kbr, (num_layers, hidden),
                                minval=-bound, maxval=bound, dtype=jnp.float32)
    w_sig = jax.random.uniform(kws, (num_layers, hidden, hidden),
                               minval=-bound, maxval=bound, dtype=jnp.float32)
    b_sig = jax.random.uniform(kbs, (num_layers, hidden),
                               minval=-bound, maxval=bound, dtype=jnp.float32)

    out = highway_network(x, w_relu, b_relu, w_sig, b_sig)
    out = jax.block_until_ready(out)
    assert out.shape == (batch, hidden)

    # Check 1: exact numerics (bf16 matmul operands, f32 accumulate) — tight tol.
    w_cat, b_cat = fuse_weights(w_relu, b_relu, w_sig, b_sig)
    ref_bf16 = highway_reference_kernel_numerics(x, w_cat, b_cat)
    assert jnp.allclose(out, ref_bf16, atol=1e-4, rtol=1e-4), "mismatch vs bf16 reference"

    # Check 2: full-precision PyTorch-semantics reference — loose tol (bf16 matmuls).
    ref_f32 = highway_reference_f32(x, w_relu, b_relu, w_sig, b_sig)
    assert jnp.allclose(out, ref_f32, atol=1e-1, rtol=1e-1), "mismatch vs f32 reference"

    print("KERNEL_OK")
</pallas_src>

<mosaic_0001>
module attributes {stable_mosaic.version = 11 : i64} {
  func.func @highway_kernel(%arg0: i32, %arg1: memref<128x128xf32, #tpu.memory_space<vmem>>, %arg2: memref<4x128x256xbf16, #tpu.memory_space<vmem>>, %arg3: memref<4x1x256xf32, #tpu.memory_space<vmem>>, %arg4: memref<128x128xf32, #tpu.memory_space<vmem>>) attributes {dimension_semantics = [#tpu.dimension_semantics<parallel>], iteration_bounds = array<i64: 2>, scalar_prefetch = 0 : i64, scratch_operands = 0 : i64, tpu.core_type = #tpu.core_type<tc>, window_params = [{transform_indices = @transform_0, window_bounds = array<i64: 128, 128>}, {pipeline_mode = #tpu.pipeline_mode<synchronous>, transform_indices = @transform_1, window_bounds = array<i64: 4, 128, 256>}, {pipeline_mode = #tpu.pipeline_mode<synchronous>, transform_indices = @transform_2, window_bounds = array<i64: 4, 1, 256>}, {transform_indices = @transform_3, window_bounds = array<i64: 128, 128>}]} {
    %c0 = arith.constant 0 : index
    %c0_0 = arith.constant 0 : index
    %0 = vector.load %arg1[%c0, %c0_0] : memref<128x128xf32, #tpu.memory_space<vmem>>, vector<128x128xf32>
    %1 = arith.truncf %0 : vector<128x128xf32> to vector<128x128xbf16>
    %c0_1 = arith.constant 0 : index
    %c0_2 = arith.constant 0 : index
    %c0_3 = arith.constant 0 : index
    %2 = vector.load %arg2[%c0_1, %c0_2, %c0_3] : memref<4x128x256xbf16, #tpu.memory_space<vmem>>, vector<1x128x256xbf16>
    %3 = vector.shape_cast %2 : vector<1x128x256xbf16> to vector<128x256xbf16>
    %cst = arith.constant dense<0.000000e+00> : vector<128x256xf32>
    %4 = tpu.matmul %1, %3, %cst {dimension_numbers = #tpu.dot_dimension_numbers<[1], [0], [0], [1], [0, 0, 1, 1], [], []>} : vector<128x128xbf16>, vector<128x256xbf16>, vector<128x256xf32> -> vector<128x256xf32>
    %c0_4 = arith.constant 0 : index
    %c0_5 = arith.constant 0 : index
    %c0_6 = arith.constant 0 : index
    %5 = vector.load %arg3[%c0_4, %c0_5, %c0_6] : memref<4x1x256xf32, #tpu.memory_space<vmem>>, vector<1x1x256xf32>
    %6 = vector.shape_cast %5 : vector<1x1x256xf32> to vector<1x256xf32>
    %7 = vector.broadcast %6 : vector<1x256xf32> to vector<128x256xf32>
    %8 = arith.addf %4, %7 : vector<128x256xf32>
    %9 = vector.extract_strided_slice %8 {offsets = [0, 0], sizes = [128, 128], strides = [1, 1]} : vector<128x256xf32> to vector<128x128xf32>
    %cst_7 = arith.constant 0.000000e+00 : f32
    %10 = vector.broadcast %cst_7 : f32 to vector<128x128xf32>
    %11 = arith.maximumf %9, %10 : vector<128x128xf32>
    %12 = vector.extract_strided_slice %8 {offsets = [0, 128], sizes = [128, 128], strides = [1, 1]} : vector<128x256xf32> to vector<128x128xf32>
    %13 = arith.negf %12 : vector<128x128xf32>
    %14 = math.exp %13 : vector<128x128xf32>
    %cst_8 = arith.constant 1.000000e+00 : f32
    %15 = vector.broadcast %cst_8 : f32 to vector<128x128xf32>
    %16 = arith.addf %15, %14 : vector<128x128xf32>
    %17 = arith.divf %15, %16 : vector<128x128xf32>
    %18 = arith.subf %11, %0 : vector<128x128xf32>
    %19 = arith.mulf %17, %18 : vector<128x128xf32>
    %20 = arith.addf %0, %19 : vector<128x128xf32>
    %21 = arith.truncf %20 : vector<128x128xf32> to vector<128x128xbf16>
    %c1 = arith.constant 1 : index
    %c0_9 = arith.constant 0 : index
    %c0_10 = arith.constant 0 : index
    %22 = vector.load %arg2[%c1, %c0_9, %c0_10] : memref<4x128x256xbf16, #tpu.memory_space<vmem>>, vector<1x128x256xbf16>
    %23 = vector.shape_cast %22 : vector<1x128x256xbf16> to vector<128x256xbf16>
    %cst_11 = arith.constant dense<0.000000e+00> : vector<128x256xf32>
    %24 = tpu.matmul %21, %23, %cst_11 {dimension_numbers = #tpu.dot_dimension_numbers<[1], [0], [0], [1], [0, 0, 1, 1], [], []>} : vector<128x128xbf16>, vector<128x256xbf16>, vector<128x256xf32> -> vector<128x256xf32>
    %c1_12 = arith.constant 1 : index
    %c0_13 = arith.constant 0 : index
    %c0_14 = arith.constant 0 : index
    %25 = vector.load %arg3[%c1_12, %c0_13, %c0_14] : memref<4x1x256xf32, #tpu.memory_space<vmem>>, vector<1x1x256xf32>
    %26 = vector.shape_cast %25 : vector<1x1x256xf32> to vector<1x256xf32>
    %27 = vector.broadcast %26 : vector<1x256xf32> to vector<128x256xf32>
    %28 = arith.addf %24, %27 : vector<128x256xf32>
    %29 = vector.extract_strided_slice %28 {offsets = [0, 0], sizes = [128, 128], strides = [1, 1]} : vector<128x256xf32> to vector<128x128xf32>
    %cst_15 = arith.constant 0.000000e+00 : f32
    %30 = vector.broadcast %cst_15 : f32 to vector<128x128xf32>
    %31 = arith.maximumf %29, %30 : vector<128x128xf32>
    %32 = vector.extract_strided_slice %28 {offsets = [0, 128], sizes = [128, 128], strides = [1, 1]} : vector<128x256xf32> to vector<128x128xf32>
    %33 = arith.negf %32 : vector<128x128xf32>
    %34 = math.exp %33 : vector<128x128xf32>
    %cst_16 = arith.constant 1.000000e+00 : f32
    %35 = vector.broadcast %cst_16 : f32 to vector<128x128xf32>
    %36 = arith.addf %35, %34 : vector<128x128xf32>
    %37 = arith.divf %35, %36 : vector<128x128xf32>
    %38 = arith.subf %31, %20 : vector<128x128xf32>
    %39 = arith.mulf %37, %38 : vector<128x128xf32>
    %40 = arith.addf %20, %39 : vector<128x128xf32>
    %41 = arith.truncf %40 : vector<128x128xf32> to vector<128x128xbf16>
    %c2 = arith.constant 2 : index
    %c0_17 = arith.constant 0 : index
    %c0_18 = arith.constant 0 : index
    %42 = vector.load %arg2[%c2, %c0_17, %c0_18] : memref<4x128x256xbf16, #tpu.memory_space<vmem>>, vector<1x128x256xbf16>
    %43 = vector.shape_cast %42 : vector<1x128x256xbf16> to vector<128x256xbf16>
    %cst_19 = arith.constant dense<0.000000e+00> : vector<128x256xf32>
    %44 = tpu.matmul %41, %43, %cst_19 {dimension_numbers = #tpu.dot_dimension_numbers<[1], [0], [0], [1], [0, 0, 1, 1], [], []>} : vector<128x128xbf16>, vector<128x256xbf16>, vector<128x256xf32> -> vector<128x256xf32>
    %c2_20 = arith.constant 2 : index
    %c0_21 = arith.constant 0 : index
    %c0_22 = arith.constant 0 : index
    %45 = vector.load %arg3[%c2_20, %c0_21, %c0_22] : memref<4x1x256xf32, #tpu.memory_space<vmem>>, vector<1x1x256xf32>
    %46 = vector.shape_cast %45 : vector<1x1x256xf32> to vector<1x256xf32>
    %47 = vector.broadcast %46 : vector<1x256xf32> to vector<128x256xf32>
    %48 = arith.addf %44, %47 : vector<128x256xf32>
    %49 = vector.extract_strided_slice %48 {offsets = [0, 0], sizes = [128, 128], strides = [1, 1]} : vector<128x256xf32> to vector<128x128xf32>
    %cst_23 = arith.constant 0.000000e+00 : f32
    %50 = vector.broadcast %cst_23 : f32 to vector<128x128xf32>
    %51 = arith.maximumf %49, %50 : vector<128x128xf32>
    %52 = vector.extract_strided_slice %48 {offsets = [0, 128], sizes = [128, 128], strides = [1, 1]} : vector<128x256xf32> to vector<128x128xf32>
    %53 = arith.negf %52 : vector<128x128xf32>
    %54 = math.exp %53 : vector<128x128xf32>
    %cst_24 = arith.constant 1.000000e+00 : f32
    %55 = vector.broadcast %cst_24 : f32 to vector<128x128xf32>
    %56 = arith.addf %55, %54 : vector<128x128xf32>
    %57 = arith.divf %55, %56 : vector<128x128xf32>
    %58 = arith.subf %51, %40 : vector<128x128xf32>
    %59 = arith.mulf %57, %58 : vector<128x128xf32>
    %60 = arith.addf %40, %59 : vector<128x128xf32>
    %61 = arith.truncf %60 : vector<128x128xf32> to vector<128x128xbf16>
    %c3 = arith.constant 3 : index
    %c0_25 = arith.constant 0 : index
    %c0_26 = arith.constant 0 : index
    %62 = vector.load %arg2[%c3, %c0_25, %c0_26] : memref<4x128x256xbf16, #tpu.memory_space<vmem>>, vector<1x128x256xbf16>
    %63 = vector.shape_cast %62 : vector<1x128x256xbf16> to vector<128x256xbf16>
    %cst_27 = arith.constant dense<0.000000e+00> : vector<128x256xf32>
    %64 = tpu.matmul %61, %63, %cst_27 {dimension_numbers = #tpu.dot_dimension_numbers<[1], [0], [0], [1], [0, 0, 1, 1], [], []>} : vector<128x128xbf16>, vector<128x256xbf16>, vector<128x256xf32> -> vector<128x256xf32>
    %c3_28 = arith.constant 3 : index
    %c0_29 = arith.constant 0 : index
    %c0_30 = arith.constant 0 : index
    %65 = vector.load %arg3[%c3_28, %c0_29, %c0_30] : memref<4x1x256xf32, #tpu.memory_space<vmem>>, vector<1x1x256xf32>
    %66 = vector.shape_cast %65 : vector<1x1x256xf32> to vector<1x256xf32>
    %67 = vector.broadcast %66 : vector<1x256xf32> to vector<128x256xf32>
    %68 = arith.addf %64, %67 : vector<128x256xf32>
    %69 = vector.extract_strided_slice %68 {offsets = [0, 0], sizes = [128, 128], strides = [1, 1]} : vector<128x256xf32> to vector<128x128xf32>
    %cst_31 = arith.constant 0.000000e+00 : f32
    %70 = vector.broadcast %cst_31 : f32 to vector<128x128xf32>
    %71 = arith.maximumf %69, %70 : vector<128x128xf32>
    %72 = vector.extract_strided_slice %68 {offsets = [0, 128], sizes = [128, 128], strides = [1, 1]} : vector<128x256xf32> to vector<128x128xf32>
    %73 = arith.negf %72 : vector<128x128xf32>
    %74 = math.exp %73 : vector<128x128xf32>
    %cst_32 = arith.constant 1.000000e+00 : f32
    %75 = vector.broadcast %cst_32 : f32 to vector<128x128xf32>
    %76 = arith.addf %75, %74 : vector<128x128xf32>
    %77 = arith.divf %75, %76 : vector<128x128xf32>
    %78 = arith.subf %71, %60 : vector<128x128xf32>
    %79 = arith.mulf %77, %78 : vector<128x128xf32>
    %80 = arith.addf %60, %79 : vector<128x128xf32>
    %c0_33 = arith.constant 0 : index
    %c0_34 = arith.constant 0 : index
    %81 = vector.load %arg4[%c0_33, %c0_34] : memref<128x128xf32, #tpu.memory_space<vmem>>, vector<128x128xf32>
    tpu.vector_store %arg4[%c0_33, %c0_34], %80 {strides = array<i32>} : memref<128x128xf32, #tpu.memory_space<vmem>>, vector<128x128xf32>,
    return
  }
  func.func @transform_0(%arg0: i32) -> (i32, i32) {
    %c0_i32 = arith.constant 0 : i32
    %c0_i32_0 = arith.constant 0 : i32
    return %arg0, %c0_i32 : i32, i32
  }
  func.func @transform_1(%arg0: i32) -> (i32, i32, i32) {
    %c0_i32 = arith.constant 0 : i32
    %c0_i32_0 = arith.constant 0 : i32
    %c0_i32_1 = arith.constant 0 : i32
    %c0_i32_2 = arith.constant 0 : i32
    return %c0_i32, %c0_i32_0, %c0_i32_1 : i32, i32, i32
  }
  func.func @transform_2(%arg0: i32) -> (i32, i32, i32) {
    %c0_i32 = arith.constant 0 : i32
    %c0_i32_0 = arith.constant 0 : i32
    %c0_i32_1 = arith.constant 0 : i32
    %c0_i32_2 = arith.constant 0 : i32
    return %c0_i32, %c0_i32_0, %c0_i32_1 : i32, i32, i32
  }
  func.func @transform_3(%arg0: i32) -> (i32, i32) {
    %c0_i32 = arith.constant 0 : i32
    %c0_i32_0 = arith.constant 0 : i32
    return %arg0, %c0_i32 : i32, i32
  }
}

</mosaic_0001>

<bundles_post_ra>
// kernel: tpu_custom_call.1
= control target key start
LH: loop header
LB: loop body
LE: loop exit
PB: predicated region body
PF: predicated region fallthrough
CT: control target
= control target key end

     0   :  { %8 = vsyncpa [#allocation3], 0  ;;  %s3563_s0 = inlined_call_operand.hbm [shape: f32[256,128], index: 0, kind: input, shape index: {}]   ;;  %s3564_s1 = inlined_call_operand.hbm [shape: bf16[4,128,256], index: 1, kind: input, shape index: {}]   ;;  %s3565_s2 = inlined_call_operand.hbm [shape: f32[4,1,256], index: 2, kind: input, shape index: {}]   ;;  %s3566_s3 = inlined_call_operand.hbm [shape: f32[256,128], index: 3, kind: output, shape index: {}]  }
   0x1   :  { %10 = vsyncpa [#allocation3 + $0x1], 0 }
   0x2   :  { %11 = vsyncpa [#allocation6], 0 }
   0x3   :  { %12 = vsyncpa [#allocation4], 0 }
   0x4   :  { %14 = vsyncpa [#allocation4 + $0x1], 0  ;;  %s2676_s12 = smov 0   ;;  %s2678_s13 = smov 0  }
   0x5   :  { %s2680_s14 = smov 0   ;;  %s2682_s15 = smov 0  }
   0x6 LB: > { %s2697_s16 = sadd.s32 4294967295, %s2643_s15   ;;  %s1921_s17 = sadd.s32 4294967294, %s2643_s15   ;;  %s2643_s15 = sphi %s2682_s15, %s3587_s15   ;;  %s2639_s14 = sphi %s2680_s14, %s3586_s14   ;;  %s2635_s13 = sphi %s2678_s13, %s3585_s13   ;;  %s2631_s12 = sphi %s2676_s12, %s3584_s12  }
   0x7   : > { %p40_p0 = scmp.ne.s32.totalorder %s2635_s13, %s2631_s12  ;;  %p3567_p1 = scmp.eq.s32.totalorder %s2697_s16, 0 }
   0x8   : > { %p106_p2 = scmp.eq.s32.totalorder %s2697_s16, 1  ;;  %p112_p3 = scmp.eq.s32.totalorder %s1921_s17, 1 }
   0x9   : > { %p2706_p4 = por %p3567_p1, %p40_p0  ;;  %p1922_p5 = scmp.ge.s32.totalorder %s2643_s15, 1 }
   0xa   : > { %p2711_p6 = por %p112_p3, %p40_p0  ;;  %p119_p7 = scmp.lt.s32.totalorder %s2643_s15, 3 }
   0xb   : > { %s3571_s18 = scalar_select %p2706_p4, 1, 0 }
   0xc   : > { %s3572_s19 = scalar_select %p2711_p6, 1, 0 }
   0xd   : > { %p2716_p8 = pnand %p1922_p5, %p119_p7  ;;  %s2645_s21 = smov [#allocation5]  }
   0xe   : > { %s131_s22 = sshll.u32 %s2645_s21, 4  ;;  %s2646_s24 = smov [#allocation7]   ;;  %s132_s22 = int_to_ptr.vmem [resolvable:$true] %s131_s22 }
   0xf   : > { %s3573_s20 = scalar_select %p2716_p8, 1, 0 }
  0x10   : > { %p2081_p9 = pneg %p2716_p8  ;;  %s144_s25 = sshll.u32 %s2646_s24, 4  ;;  %s145_s25 = int_to_ptr.vmem [resolvable:$true] %s144_s25 }
  0x11   : > { %s2506_s26 = scalar_lea.vmem %s132_s22, 8192  ;;  %p2514_p5 = scmp.lt.s32.totalorder %s132_s22, %s132_s22 }
  0x12   : > { %p2725_p11 = pnand %p2081_p9, %p3567_p1  ;;  %p2507_p13 = scmp.ne.s32.totalorder %s132_s22, %s2506_s26 }
  0x13   : > { %p2515_p7 = scmp.lt.s32.totalorder %s2506_s26, %s2506_s26 }
  0x14   : > { %p2497_p12 = pneg %p2725_p11 }
  0x15   : > { %p2516_p10 = por %p2515_p7, %p2514_p5 }
  0x16   : > { %p2509_p0 = pnand %p2507_p13, %p2497_p12 }
  0x18   : > { %p2510_p3 = pneg %p2509_p0 }
  0x1a   : > { %p2517_p9 = pnand %p2516_p10, %p2510_p3 }
  0x1c   : > { %2520 = shalt.err (!%p2517_p9)
}
  0x1d   : > { %s2647_s27 = smov 128   ;;  %s2648_s28 = smov 8  }
  0x1e   : > { %2084 = dma.hbm_to_vmem [thread:$0]  (!%p2725_p11), %s3564_s1, 8192, %s132_s22, [#allocation6], %s2647_s27, %s2647_s27, %s2648_s28  }
  0x1f   : > { %s2532_s4 = scalar_lea.vmem %s145_s25, 128  ;;  %p2540_p10 = scmp.lt.s32.totalorder %s145_s25, %s145_s25 }
  0x20   : > { %p2533_p13 = scmp.ne.s32.totalorder %s145_s25, %s2532_s4  ;;  %p2541_p3 = scmp.lt.s32.totalorder %s2532_s4, %s2532_s4 }
  0x22   : > { %p2535_p0 = pnand %p2533_p13, %p2497_p12  ;;  %p2542_p7 = por %p2541_p3, %p2540_p10 }
  0x24   : > { %p2536_p5 = pneg %p2535_p0 }
  0x26   : > { %p2543_p9 = pnand %p2542_p7, %p2536_p5 }
  0x28   : > { %2546 = shalt.err (!%p2543_p9)
}
  0x29   : > { %s2649_s5 = smov 32   ;;  %s2650_s6 = smov 2  }
  0x2a   : > { %2087 = dma.hbm_to_vmem [thread:$0]  (!%p2725_p11), %s3565_s2, 128, %s145_s25, [#allocation6], %s2649_s5, %s2649_s5, %s2650_s6  }
  0x2b   : > { %s2751_s9 = sadd.s32 1, %s2643_s15   ;;  %s27_s11 = sadd.s32 1, %s2639_s14 }
  0x2c   : > { %s24_s10 = ssub.s32 %s2643_s15, %s2751_s9  ;;  %p34_p13 = scmp.ne.s32.totalorder %s2639_s14, %s2635_s13 }
  0x2d   : > { %p25_p12 = scmp.eq.s32.totalorder %s24_s10, 0  ;;  %p35_p0 = scmp.eq.s32.totalorder %s2643_s15, 0 }
  0x2e   : > { %p2764_p10 = por %p106_p2, %p34_p13  ;;  %p2098_p3 = scmp.lt.s32.totalorder %s2643_s15, 2 }
  0x2f   : > { %s2760_s17 = scalar_select %p25_p12, %s2639_s14, %s27_s11  }
  0x30   : > { %p36_p5 = por %p35_p0, %p34_p13  ;;  %s158_s22 = sand.u32 1, %s2639_s14  }
  0x31   : > { %s3575_s21 = scalar_select %p2764_p10, 1, 0 }
  0x32   : > { %s1926_s23 = sshll.u32 %s158_s22, 7  ;;  %s2067_s24 = sshll.u32 %s2643_s15, 11 }
  0x33   : > { %s2774_s29 = scalar_lea.hbm %s3563_s0, %s2067_s24  ;;  %s162_s30 = scalar_lea.vmem [#allocation2], %s1926_s23 }
  0x34   : > { %s169_s4 = sshll.u32 %s162_s30, 4  ;;  %p2778_p2 = pnand %p2098_p3, %p36_p5  ;;  %s2776_s4 = int_to_ptr.vmem [resolvable:$true] %s169_s4 }
  0x35   : > { %s2782_s6 = scalar_lea.sflag [#allocation3], %s158_s22  ;;  %s2547_s7 = scalar_lea.hbm %s2774_s29, 2048 }
  0x36   : > { %p2548_p11 = scmp.ne.s32.totalorder %s2774_s29, %s2547_s7  ;;  %p2549_p7 = pneg %p2778_p2 }
  0x37   : > { %s2552_s11 = scalar_lea.hbm %s3563_s0, 4096  ;;  %p2553_p13 = scmp.lt.s32.totalorder %s2774_s29, %s3563_s0 }
  0x38   : > { %p2550_p9 = pnand %p2549_p7, %p2548_p11  ;;  %p2554_p0 = scmp.lt.s32.totalorder %s2552_s11, %s2547_s7 }
  0x3a   : > { %p2551_p12 = pneg %p2550_p9  ;;  %p2555_p5 = por %p2554_p0, %p2553_p13 }
  0x3c   : > { %p2556_p3 = pnand %p2555_p5, %p2551_p12 }
  0x3e   : > { %2559 = shalt.err (!%p2556_p3)
}
  0x3f   : > { %s2560_s22 = scalar_lea.vmem %s2776_s4, 2048  ;;  %s2651_s25 = smov [#allocation2]  }
  0x40   : > { %p2561_p1 = scmp.ne.s32.totalorder %s2776_s4, %s2560_s22  ;;  %s2565_s26 = sshll.u32 %s2651_s25, 4  ;;  %s2566_s26 = int_to_ptr.vmem [resolvable:$false] %s2565_s26 }
  0x41   : > { %s2567_s30 = scalar_lea.vmem %s2566_s26, 4096  ;;  %p2568_p9 = scmp.lt.s32.totalorder %s2776_s4, %s2566_s26 }
  0x42   : > { %p2563_p6 = pnand %p2561_p1, %p2549_p7  ;;  %p2569_p10 = scmp.lt.s32.totalorder %s2567_s30, %s2560_s22 }
  0x44   : > { %p2564_p11 = pneg %p2563_p6  ;;  %p2570_p4 = por %p2569_p10, %p2568_p9 }
  0x46   : > { %p2571_p8 = pnand %p2570_p4, %p2564_p11 }
  0x48   : > { %2574 = shalt.err (!%p2571_p8)
}
  0x49   : > { %2091 = dma.hbm_to_vmem [thread:$0]  (!%p2778_p2), %s2774_s29, 2048, %s2776_s4, %s2782_s6, %s2647_s27, %s2647_s27, %s2648_s28  }
  0x4a   : > { %p3577_p1 = scmp.ne.s32.totalorder %s3573_s20, 0 }
  0x4b   : > { %s2809_s7 = sand.u32 (!%p3577_p1), 1, %s2635_s13   ;;  %p3578_p4 = scmp.ne.s32.totalorder (!%p3577_p1), %s3571_s18, 0 }
  0x4c   : > { %181 = sbr.rel (%p3577_p1) target bundleno = 1147 (0x47b), region = 32  ;;  %s1930_s8 = sshll.u32 (!%p3577_p1), %s2809_s7, 7 }
  0x4d   : > { %s184_s10 = scalar_lea.sflag (!%p3577_p1), [#allocation3], %s2809_s7  ;;  %s2815_s5 = scalar_lea.vmem (!%p3577_p1), [#allocation2], %s1930_s8 }
  0x51   : > { %2618 = dma.done.wait (%p3578_p4), %s184_s10, 2048  }
  0x52   : > { %2620 = vsyncadd (%p3578_p4), %s184_s10, 4294965248  ;;  %p3579_p6 = scmp.eq.s32.totalorder %s2697_s16, 0 }
  0x54   : > { %2622 = dma.done.wait (%p3579_p6), [#allocation6], 8320   ;;  %p3580_p8 = pmov %p3579_p6 }
  0x55   : > { %v2652_v0 = vmov 0   ;;  %v2143_v1 = vld [vmem:[#allocation5 + $0x74] ss:$8 sps:$4 sm:$0xff]   ;;  %v2145_v2 = vld [vmem:[#allocation5 + $0x70] ss:$8 sps:$4 sm:$0xff]   ;;  %v2828_v17 = vld [vmem:[%s2815_s5] sm:$0xff]  ;;  %v263_v63 = vlaneseq }
  0x56   : > { %2624 = vsyncadd (%p3580_p8), [#allocation6], 4294958976  ;;  %385 = vmatprep.mubr.bf16.mxu0 %v2652_v0  ;;  %776 = vmatprep.mubr.bf16.mxu1 %v2652_v0  ;;  %v2146_v3 = vld [vmem:[#allocation5 + $0x64] ss:$8 sps:$4 sm:$0xff]   ;;  %v2148_v4 = vld [vmem:[#allocation5 + $0x60] ss:$8 sps:$4 sm:$0xff]  }
  0x57   : > { %353 = vmatprep.subr.bf16.mxu0 %v2143_v1  ;;  %v2149_v5 = vld [vmem:[#allocation5 + $0x54] ss:$8 sps:$4 sm:$0xff]   ;;  %v2151_v6 = vld [vmem:[#allocation5 + $0x50] ss:$8 sps:$4 sm:$0xff]   ;;  %v2152_v7 = vld [vmem:[#allocation5 + $0x44] ss:$8 sps:$4 sm:$0xff]  }
  0x58   : > { %354 = vmatpush1.bf16.msra.mxu0 %v2145_v2  ;;  %v2154_v8 = vld [vmem:[#allocation5 + $0x40] ss:$8 sps:$4 sm:$0xff]   ;;  %v2155_v9 = vld [vmem:[#allocation5 + $0x34] ss:$8 sps:$4 sm:$0xff]   ;;  %v2157_v10 = vld [vmem:[#allocation5 + $0x30] ss:$8 sps:$4 sm:$0xff]  }
  0x59   : > { %355 = vmatprep.subr.bf16.mxu0 %v2146_v3  ;;  %v2158_v11 = vld [vmem:[#allocation5 + $0x24] ss:$8 sps:$4 sm:$0xff]   ;;  %v2160_v12 = vld [vmem:[#allocation5 + $0x20] ss:$8 sps:$4 sm:$0xff]   ;;  %v2161_v13 = vld [vmem:[#allocation5 + $0x14] ss:$8 sps:$4 sm:$0xff]  }
  0x5a   : > { %v2163_v14 = vld [vmem:[#allocation5 + $0x10] ss:$8 sps:$4 sm:$0xff]   ;;  %v2164_v15 = vld [vmem:[#allocation5 + $0x4] ss:$8 sps:$4 sm:$0xff]   ;;  %v2166_v16 = vld [vmem:[#allocation5] ss:$8 sps:$4 sm:$0xff]  }
  0x5b   : > { %v2831_v18 = vld [vmem:[%s2815_s5 + $0x8] sm:$0xff]  ;;  %v2837_v20 = vld [vmem:[%s2815_s5 + $0x10] sm:$0xff]  ;;  %v2840_v21 = vld [vmem:[%s2815_s5 + $0x18] sm:$0xff]  ;;  %v264_v1 = vshrl.u32 %v263_v63, 7  ;;  %s3423_s18 = scalar_lea.vmem [#allocation8], %s1930_s8  ;;  %s2068_s20 = sshll.u32 %s2697_s16, 11 }
  0x5c   : > { %356 = vmatpush1.bf16.msra.mxu0 %v2148_v4  ;;  %v237_v19 = vpack.c.bf16 %v2831_v18, %v2828_v17  ;;  %v238_v22 = vpack.c.bf16 %v2840_v21, %v2837_v20  ;;  %v2846_v23 = vld [vmem:[%s2815_s5 + $0x20] sm:$0xff]  ;;  %v2849_v24 = vld [vmem:[%s2815_s5 + $0x28] sm:$0xff]  ;;  %v2855_v26 = vld [vmem:[%s2815_s5 + $0x30] sm:$0xff]  ;;  %s1829_s27 = sshll.u32 %s3423_s18, 4  ;;  %s3516_s4 = scalar_lea.hbm %s3566_s3, %s2068_s20  ;;  %s3518_s27 = int_to_ptr.vmem [resolvable:$true] %s1829_s27 }
  0x5d   : > { %357 = vmatprep.subr.bf16.mxu0 %v2149_v5  ;;  %v239_v25 = vpack.c.bf16 %v2849_v24, %v2846_v23  ;;  %v2858_v27 = vld [vmem:[%s2815_s5 + $0x38] sm:$0xff]  ;;  %v2864_v29 = vld [vmem:[%s2815_s5 + $0x40] sm:$0xff]  ;;  %v2867_v30 = vld [vmem:[%s2815_s5 + $0x48] sm:$0xff]  ;;  %v2899_v2 = vsub.s32 1, %v264_v1  ;;  %s1816_s6 = scalar_lea.sflag [#allocation4], %s2809_s7  ;;  %s2575_s11 = scalar_lea.vmem %s3518_s27, 2048 }
  0x5e   : > { %v240_v28 = vpack.c.bf16 %v2858_v27, %v2855_v26  ;;  %v241_v31 = vpack.c.bf16 %v2867_v30, %v2864_v29  ;;  %v2873_v32 = vld [vmem:[%s2815_s5 + $0x50] sm:$0xff]  ;;  %v2876_v33 = vld [vmem:[%s2815_s5 + $0x58] sm:$0xff]  ;;  %v2882_v35 = vld [vmem:[%s2815_s5 + $0x60] sm:$0xff]  ;;  %p2576_p10 = scmp.ne.s32.totalorder %s3518_s27, %s2575_s11  ;;  %p3581_p2 = scmp.ne.s32.totalorder %s3575_s21, 0 }
  0x5f   : > { %v242_v34 = vpack.c.bf16 %v2876_v33, %v2873_v32  ;;  %v2885_v36 = vld [vmem:[%s2815_s5 + $0x68] sm:$0xff]  ;;  %v2891_v38 = vld [vmem:[%s2815_s5 + $0x70] sm:$0xff]  ;;  %v2894_v39 = vld [vmem:[%s2815_s5 + $0x78] sm:$0xff]  ;;  %s2653_s16 = smov [#allocation8]  }
  0x60   : > { %358 = vmatpush1.bf16.msra.mxu0 %v2151_v6  ;;  %v243_v37 = vpack.c.bf16 %v2885_v36, %v2882_v35  ;;  %v244_v40 = vpack.c.bf16 %v2894_v39, %v2891_v38  ;;  %v2167_v41 = vld [vmem:[#allocation5 + $0xf4] ss:$8 sps:$4 sm:$0xff]   ;;  %v2169_v42 = vld [vmem:[#allocation5 + $0xf0] ss:$8 sps:$4 sm:$0xff]   ;;  %v2170_v43 = vld [vmem:[#allocation5 + $0xe4] ss:$8 sps:$4 sm:$0xff]   ;;  %p2577_p7 = pnand %p2576_p10, %p3581_p2 }
  0x61   : > { %359 = vmatprep.subr.bf16.mxu0 %v2152_v7  ;;  %744 = vmatprep.subr.bf16.mxu1 %v2167_v41  ;;  %v2172_v44 = vld [vmem:[#allocation5 + $0xe0] ss:$8 sps:$4 sm:$0xff]   ;;  %v2173_v45 = vld [vmem:[#allocation5 + $0xd4] ss:$8 sps:$4 sm:$0xff]   ;;  %v2175_v46 = vld [vmem:[#allocation5 + $0xd0] ss:$8 sps:$4 sm:$0xff]  }
  0x62   : > { %745 = vmatpush1.bf16.msra.mxu1 %v2169_v42  ;;  %v2176_v47 = vld [vmem:[#allocation5 + $0xc4] ss:$8 sps:$4 sm:$0xff]   ;;  %v2178_v48 = vld [vmem:[#allocation5 + $0xc0] ss:$8 sps:$4 sm:$0xff]   ;;  %v2179_v49 = vld [vmem:[#allocation5 + $0xb4] ss:$8 sps:$4 sm:$0xff]   ;;  %p2578_p12 = pneg %p2577_p7 }
  0x63   : > { %746 = vmatprep.subr.bf16.mxu1 %v2170_v43  ;;  %v2181_v50 = vld [vmem:[#allocation5 + $0xb0] ss:$8 sps:$4 sm:$0xff]   ;;  %v2182_v51 = vld [vmem:[#allocation5 + $0xa4] ss:$8 sps:$4 sm:$0xff]   ;;  %v2184_v52 = vld [vmem:[#allocation5 + $0xa0] ss:$8 sps:$4 sm:$0xff]  }
  0x64   : > { %360 = vmatpush1.bf16.msra.mxu0 %v2154_v8  ;;  %v2185_v53 = vld [vmem:[#allocation5 + $0x94] ss:$8 sps:$4 sm:$0xff]   ;;  %v2187_v54 = vld [vmem:[#allocation5 + $0x90] ss:$8 sps:$4 sm:$0xff]   ;;  %v2188_v55 = vld [vmem:[#allocation5 + $0x84] ss:$8 sps:$4 sm:$0xff]  }
  0x65   : > { %361 = vmatprep.subr.bf16.mxu0 %v2155_v9  ;;  %v2190_v56 = vld [vmem:[#allocation5 + $0x80] ss:$8 sps:$4 sm:$0xff]   ;;  %v2191_v57 = vld [vmem:[#allocation5 + $0x170] ss:$8 sps:$4 sm:$0xff]   ;;  %v2193_v58 = vld [vmem:[#allocation5 + $0x174] ss:$8 sps:$4 sm:$0xff]  }
  0x66   : > { %747 = vmatpush1.bf16.msra.mxu1 %v2172_v44  ;;  %v2196_v59 = vld [vmem:[#allocation5 + $0x164] ss:$8 sps:$4 sm:$0xff]   ;;  %v2194_v60 = vld [vmem:[#allocation5 + $0x160] ss:$8 sps:$4 sm:$0xff]   ;;  %v2199_v61 = vld [vmem:[#allocation5 + $0x154] ss:$8 sps:$4 sm:$0xff]  }
  0x67   : > { %748 = vmatprep.subr.bf16.mxu1 %v2173_v45  ;;  %v2197_v62 = vld [vmem:[#allocation5 + $0x150] ss:$8 sps:$4 sm:$0xff]   ;;  %v261_v3 = vld [vmem:[#allocation7] sm:$0x3]  ;;  %v2913_v42 = vsub.s32 0, %v264_v1  ;;  %s2579_s23 = sshll.u32 %s2653_s16, 4  ;;  %s2580_s23 = int_to_ptr.vmem [resolvable:$false] %s2579_s23 }
  0x68   : > { %362 = vmatpush1.bf16.msra.mxu0 %v2157_v10  ;;  %v2902_v4 = vrot.slane %v261_v3, %v2899_v2  ;;  %s2581_s24 = scalar_lea.vmem %s2580_s23, 4096  ;;  %p2582_p13 = scmp.lt.s32.totalorder %s3518_s27, %s2580_s23 }
  0x69   : > { %363 = vmatprep.subr.bf16.mxu0 %v2158_v11  ;;  %p2583_p0 = scmp.lt.s32.totalorder %s2581_s24, %s2575_s11 }
  0x6a   : > { %749 = vmatpush1.bf16.msra.mxu1 %v2175_v46 }
  0x6b   : > { %750 = vmatprep.subr.bf16.mxu1 %v2176_v47  ;;  %p2584_p5 = por %p2583_p0, %p2582_p13 }
  0x6c   : > { %364 = vmatpush1.bf16.msra.mxu0 %v2160_v12 }
  0x6d   : > { %365 = vmatprep.subr.bf16.mxu0 %v2161_v13  ;;  %p2585_p3 = pnand %p2584_p5, %p2578_p12 }
  0x6e   : > { %751 = vmatpush1.bf16.msra.mxu1 %v2178_v48 }
  0x6f   : > { %752 = vmatprep.subr.bf16.mxu1 %v2179_v49  ;;  %v2919_v49 = vrot.slane %v261_v3, %v2913_v42 }
  0x70   : > { %366 = vmatpush1.bf16.msra.mxu0 %v2163_v14 }
  0x71   : > { %367 = vmatprep.subr.bf16.mxu0 %v2164_v15 }
  0x72   : > { %753 = vmatpush1.bf16.msra.mxu1 %v2181_v50 }
  0x73   : > { %754 = vmatprep.subr.bf16.mxu1 %v2182_v51 }
  0x74   : > { %368 = vmatpush1.bf16.msra.mxu0 %v2166_v16 }
  0x75   : > { %1135 = vmatprep.subr.bf16.mxu0 %v2193_v58 }
  0x76   : > { %755 = vmatpush1.bf16.msra.mxu1 %v2184_v52 }
  0x77   : > { %386 = vmatmul.mubr.bf16.vlgmr.msra.gmra.mxu0 %v237_v19  ;;  %756 = vmatprep.subr.bf16.mxu1 %v2185_v53 }
  0x78   : > { %395 = vmatprep.mubr.bf16.mxu0 %v2652_v0  ;;  %1136 = vmatpush1.bf16.msra.mxu0 %v2191_v57 }
  0x79   : > { %1137 = vmatprep.subr.bf16.mxu0 %v2196_v59 }
  0x7a   : > { %757 = vmatpush1.bf16.msra.mxu1 %v2187_v54 }
  0x7b   : > { %758 = vmatprep.subr.bf16.mxu1 %v2188_v55 }
  0x7c   : > { %1138 = vmatpush1.bf16.msra.mxu0 %v2194_v60 }
  0x7d   : > { %1139 = vmatprep.subr.bf16.mxu0 %v2199_v61 }
  0x7e   : > { %759 = vmatpush1.bf16.msra.mxu1 %v2190_v56 }
  0x7f   : > { %396 = vmatmul.mubr.bf16.gmra.mxu0 %v238_v22 }
  0x80   : > { %405 = vmatprep.mubr.bf16.mxu0 %v2652_v0  ;;  %1140 = vmatpush1.bf16.msra.mxu0 %v2197_v62 }
  0x87   : > { %406 = vmatmul.mubr.bf16.gmra.mxu0 %v239_v25 }
  0x88   : > { %415 = vmatprep.mubr.bf16.mxu0 %v2652_v0 }
  0x8f   : > { %416 = vmatmul.mubr.bf16.gmra.mxu0 %v240_v28 }
  0x90   : > { %425 = vmatprep.mubr.bf16.mxu0 %v2652_v0 }
  0x97   : > { %426 = vmatmul.mubr.bf16.gmra.mxu0 %v241_v31 }
  0x98   : > { %435 = vmatprep.mubr.bf16.mxu0 %v2652_v0 }
  0x9f   : > { %436 = vmatmul.mubr.bf16.gmra.mxu0 %v242_v34 }
  0xa0   : > { %445 = vmatprep.mubr.bf16.mxu0 %v2652_v0 }
  0xa7   : > { %446 = vmatmul.mubr.bf16.gmra.mxu0 %v243_v37 }
  0xa8   : > { %455 = vmatprep.mubr.bf16.mxu0 %v2652_v0 }
  0xaf   : > { %456 = vmatmul.mubr.bf16.gmra.mxu0 %v244_v40 }
  0xb0   : > { %1167 = vmatprep.mubr.bf16.mxu0 %v2652_v0 }
 0x137   : > { %v387_v5 = vpop.f32.mrf.mxu0 }
 0x138   : > { %v388_v56 = vadd.f32 %v387_v5, %v2919_v49 }
 0x139   : > { %v389_v6 = vpop.f32.mrf.mxu0 }
 0x13a   : > { %v390_v7 = vadd.f32 %v389_v6, %v2902_v4  ;;  %v466_v1 = vmax.f32 %v388_v56, 0.0 }
 0x13b   : > { %v391_v8 = vpop.f32.mrf.mxu0 }
 0x13c   : > { %v1950_v9 = vmul.f32 -1.442695, %v390_v7  ;;  %v392_v60 = vadd.f32 %v391_v8, %v2919_v49 }
 0x13d   : > { %v393_v10 = vpop.f32.mrf.mxu0 }
 0x13e   : > { %2239 = vpow2.f32 %v1950_v9  ;;  %v394_v11 = vadd.f32 %v393_v10, %v2902_v4  ;;  %v467_v9 = vmax.f32 %v392_v60, 0.0 }
 0x13f   : > { %v397_v12 = vpop.f32.mrf.mxu0 }
 0x140   : > { %v1951_v13 = vmul.f32 -1.442695, %v394_v11 }
 0x141   : > { %v399_v14 = vpop.f32.mrf.mxu0 }
 0x142   : > { %2241 = vpow2.f32 %v1951_v13  ;;  %v400_v15 = vadd.f32 %v399_v14, %v2902_v4  ;;  %v578_v13 = vsub.f32 %v466_v1, %v2828_v17 }
 0x143   : > { %v401_v16 = vpop.f32.mrf.mxu0 }
 0x144   : > { %v1952_v19 = vmul.f32 -1.442695, %v400_v15  ;;  %v398_v15 = vadd.f32 %v397_v12, %v2919_v49 }
 0x145   : > { %v403_v22 = vpop.f32.mrf.mxu0 }
 0x146   : > { %2243 = vpow2.f32 %v1952_v19  ;;  %v404_v25 = vadd.f32 %v403_v22, %v2902_v4  ;;  %v402_v19 = vadd.f32 %v401_v16, %v2919_v49 }
 0x147   : > { %v2908_v28 = vpop.f32.mrf.mxu0 }
 0x148   : > { %v1953_v31 = vmul.f32 -1.442695, %v404_v25 }
 0x149   : > { %v409_v34 = vpop.f32.mrf.mxu0 }
 0x14a   : > { %2245 = vpow2.f32 %v1953_v31  ;;  %v410_v37 = vadd.f32 %v409_v34, %v2902_v4  ;;  %v579_v31 = vsub.f32 %v467_v9, %v2831_v18 }
 0x14b   : > { %v2240_v40 = vpop.eup %2239  ;;  %v2911_v41 = vpop.f32.mrf.mxu0 }
 0x14c   : > { %v530_v43 = vadd.f32 1.0, %v2240_v40  ;;  %v1954_v44 = vmul.f32 -1.442695, %v410_v37 }
 0x14d   : > { %v413_v45 = vpop.f32.mrf.mxu0 }
 0x14e   : > { %2247 = vrcp.f32 %v530_v43  ;;  %v414_v46 = vadd.f32 %v413_v45, %v2902_v4 }
 0x14f   : > { %v2242_v47 = vpop.eup %2241  ;;  %2249 = vpow2.f32 %v1954_v44  ;;  %v2916_v48 = vpop.f32.mrf.mxu0 }
 0x150   : > { %v531_v50 = vadd.f32 1.0, %v2242_v47  ;;  %v1955_v51 = vmul.f32 -1.442695, %v414_v46  ;;  %v468_v47 = vmax.f32 %v398_v15, 0.0 }
 0x151   : > { %v419_v52 = vpop.f32.mrf.mxu0 }
 0x152   : > { %2251 = vrcp.f32 %v531_v50  ;;  %v420_v53 = vadd.f32 %v419_v52, %v2902_v4  ;;  %v469_v50 = vmax.f32 %v402_v19, 0.0  ;;  %v580_v60 = vsub.f32 %v468_v47, %v2837_v20 }
 0x153   : > { %v2244_v54 = vpop.eup %2243  ;;  %2253 = vpow2.f32 %v1955_v51  ;;  %v2922_v55 = vpop.f32.mrf.mxu0 }
 0x154   : > { %v532_v57 = vadd.f32 1.0, %v2244_v54  ;;  %v1956_v58 = vmul.f32 -1.442695, %v420_v53  ;;  %v581_v1 = vsub.f32 %v469_v50, %v2840_v21 }
 0x155   : > { %v423_v59 = vpop.f32.mrf.mxu0 }
 0x156   : > { %2255 = vrcp.f32 %v532_v57  ;;  %v424_v61 = vadd.f32 %v423_v59, %v2902_v4 }
 0x157   : > { %v2246_v62 = vpop.eup %2245  ;;  %2257 = vpow2.f32 %v1956_v58  ;;  %v2927_v63 = vpop.f32.mrf.mxu0 }
 0x158   : > { %v533_v3 = vadd.f32 1.0, %v2246_v62  ;;  %v1957_v6 = vmul.f32 -1.442695, %v424_v61  ;;  %v408_v61 = vadd.f32 %v2908_v28, %v2919_v49 }
 0x159   : > { %v429_v7 = vpop.f32.mrf.mxu0 }
 0x15a   : > { %2259 = vrcp.f32 %v533_v3  ;;  %v430_v5 = vadd.f32 %v429_v7, %v2902_v4 }
 0x15b   : > { %v2248_v10 = vpop.eup %2247  ;;  %2261 = vpow2.f32 %v1957_v6  ;;  %v2930_v11 = vpop.f32.mrf.mxu0  ;;  %v412_v6 = vadd.f32 %v2911_v41, %v2919_v49 }
 0x15c   : > { %v2250_v8 = vpop.eup %2249  ;;  %v1958_v14 = vmul.f32 -1.442695, %v430_v5  ;;  %v594_v37 = vmul.f32 %v2248_v10, %v578_v13 }
 0x15d   : > { %v534_v22 = vadd.f32 1.0, %v2250_v8  ;;  %v433_v25 = vpop.f32.mrf.mxu0  ;;  %v470_v8 = vmax.f32 %v408_v61, 0.0  ;;  %v471_v41 = vmax.f32 %v412_v6, 0.0  ;;  %v428_v6 = vadd.f32 %v2927_v63, %v2919_v49 }
 0x15e   : > { %2263 = vpow2.f32 %v1958_v14  ;;  %v434_v34 = vadd.f32 %v433_v25, %v2902_v4  ;;  %v2941_v52 = vadd.f32 %v594_v37, %v2828_v17 }
 0x15f   : > { %v2252_v40 = vpop.eup %2251  ;;  %2265 = vrcp.f32 %v534_v22  ;;  %v2937_v43 = vpop.f32.mrf.mxu0 }
 0x160   : > { %v2254_v44 = vpop.eup %2253  ;;  %v1959_v45 = vmul.f32 -1.442695, %v434_v34  ;;  %v595_v46 = vmul.f32 %v2252_v40, %v579_v31 }
 0x161   : > { %v535_v12 = vadd.f32 1.0, %v2254_v44  ;;  %v439_v51 = vpop.f32.mrf.mxu0  ;;  %v582_v44 = vsub.f32 %v470_v8, %v2846_v23 }
 0x162   : > { %2267 = vpow2.f32 %v1959_v45  ;;  %v440_v16 = vadd.f32 %v439_v51, %v2902_v4  ;;  %v2944_v53 = vadd.f32 %v595_v46, %v2831_v18  ;;  %v418_v45 = vadd.f32 %v2916_v48, %v2919_v49 }
 0x163   : > { %v2256_v54 = vpop.eup %2255  ;;  %2269 = vrcp.f32 %v535_v12  ;;  %v2946_v56 = vpop.f32.mrf.mxu0  ;;  %v583_v12 = vsub.f32 %v471_v41, %v2849_v24 }
 0x164   : > { %v2258_v57 = vpop.eup %2257  ;;  %v1960_v58 = vmul.f32 -1.442695, %v440_v16  ;;  %v626_v59 = vpack.c.bf16 %v2944_v53, %v2941_v52  ;;  %v596_v9 = vmul.f32 %v2256_v54, %v580_v60 }
 0x165   : > { %v536_v62 = vadd.f32 1.0, %v2258_v57  ;;  %v443_v17 = vpop.f32.mrf.mxu0 }
 0x166   : > { %2271 = vpow2.f32 %v1960_v58  ;;  %v444_v18 = vadd.f32 %v443_v17, %v2902_v4  ;;  %777 = vmatmul.mubr.bf16.vlgmr.msra.gmra.mxu1 %v626_v59  ;;  %v2967_v31 = vadd.f32 %v596_v9, %v2837_v20  ;;  %v422_v20 = vadd.f32 %v2922_v55, %v2919_v49 }
 0x167   : > { %v2260_v3 = vpop.eup %2259  ;;  %2273 = vrcp.f32 %v536_v62  ;;  %v2957_v7 = vpop.f32.mrf.mxu0  ;;  %786 = vmatprep.mubr.bf16.mxu1 %v2652_v0  ;;  %v472_v58 = vmax.f32 %v418_v45, 0.0 }
 0x168   : > { %v2262_v5 = vpop.eup %2261  ;;  %v1961_v28 = vmul.f32 -1.442695, %v444_v18  ;;  %v597_v10 = vmul.f32 %v2260_v3, %v581_v1  ;;  %v473_v17 = vmax.f32 %v422_v20, 0.0  ;;  %v442_v20 = vadd.f32 %v2946_v56, %v2919_v49 }
 0x169   : > { %v537_v13 = vadd.f32 1.0, %v2262_v5  ;;  %v449_v14 = vpop.f32.mrf.mxu0 }
 0x16a   : > { %2275 = vpow2.f32 %v1961_v28  ;;  %v450_v15 = vadd.f32 %v449_v14, %v2902_v4  ;;  %v2962_v19 = vadd.f32 %v597_v10, %v2840_v21  ;;  %v584_v28 = vsub.f32 %v472_v58, %v2855_v26 }
 0x16b   : > { %v2264_v22 = vpop.eup %2263  ;;  %2277 = vrcp.f32 %v537_v13  ;;  %v2964_v25 = vpop.f32.mrf.mxu0  ;;  %v432_v13 = vadd.f32 %v2930_v11, %v2919_v49  ;;  %v585_v14 = vsub.f32 %v473_v17, %v2858_v27  ;;  %v448_v17 = vadd.f32 %v2957_v7, %v2919_v49 }
 0x16c   : > { %v2266_v34 = vpop.eup %2265  ;;  %v538_v37 = vadd.f32 1.0, %v2264_v22  ;;  %v1962_v40 = vmul.f32 -1.442695, %v450_v15  ;;  %v627_v21 = vpack.c.bf16 %v2962_v19, %v2967_v31  ;;  %v474_v22 = vmax.f32 %v428_v6, 0.0 }
 0x16d   : > { %v453_v46 = vpop.f32.mrf.mxu0  ;;  %v598_v16 = vmul.f32 %v2266_v34, %v582_v44 }
 0x16e   : > { %2279 = vrcp.f32 %v538_v37  ;;  %v454_v47 = vadd.f32 %v453_v46, %v2902_v4  ;;  %787 = vmatmul.mubr.bf16.gmra.mxu1 %v627_v21  ;;  %v586_v46 = vsub.f32 %v474_v22, %v2864_v29  ;;  %v438_v21 = vadd.f32 %v2937_v43, %v2919_v49 }
 0x16f   : > { %v2268_v50 = vpop.eup %2267  ;;  %2281 = vpow2.f32 %v1962_v40  ;;  %v2978_v51 = vpop.f32.mrf.mxu0  ;;  %796 = vmatprep.mubr.bf16.mxu1 %v2652_v0  ;;  %v2985_v1 = vadd.f32 %v598_v16, %v2846_v23  ;;  %v475_v40 = vmax.f32 %v432_v13, 0.0  ;;  %v477_v43 = vmax.f32 %v442_v20, 0.0  ;;  %v2200_v20 = vld [vmem:[#allocation5 + $0x140] ss:$8 sps:$4 sm:$0xff]  }
 0x170   : > { %v2270_v54 = vpop.eup %2269  ;;  %v539_v48 = vadd.f32 1.0, %v2268_v50  ;;  %v1963_v57 = vmul.f32 -1.442695, %v454_v47 }
 0x171   : > { %v459_v59 = vpop.f32.mrf.mxu0  ;;  %v599_v60 = vmul.f32 %v2270_v54, %v583_v12  ;;  %v587_v12 = vsub.f32 %v475_v40, %v2867_v30  ;;  %v476_v54 = vmax.f32 %v438_v21, 0.0  ;;  %v589_v6 = vsub.f32 %v477_v43, %v2876_v33  ;;  %v2215_v43 = vld [vmem:[#allocation5 + $0x1f0] ss:$8 sps:$4 sm:$0xff]  }
 0x172   : > { %2283 = vrcp.f32 %v539_v48  ;;  %v460_v61 = vadd.f32 %v459_v59, %v2902_v4 }
 0x173   : > { %v2272_v62 = vpop.eup %2271  ;;  %2285 = vpow2.f32 %v1963_v57  ;;  %v2982_v55 = vpop.f32.mrf.mxu0  ;;  %v2988_v18 = vadd.f32 %v599_v60, %v2849_v24 }
 0x174   : > { %v2274_v3 = vpop.eup %2273  ;;  %v540_v9 = vadd.f32 1.0, %v2272_v62  ;;  %v1964_v5 = vmul.f32 -1.442695, %v460_v61  ;;  %v588_v61 = vsub.f32 %v476_v54, %v2873_v32  ;;  %v2209_v54 = vld [vmem:[#allocation5 + $0x110] ss:$8 sps:$4 sm:$0xff]  }
 0x175   : > { %v463_v10 = vpop.f32.mrf.mxu0  ;;  %v628_v8 = vpack.c.bf16 %v2988_v18, %v2985_v1  ;;  %v600_v63 = vmul.f32 %v2274_v3, %v584_v28 }
 0x176   : > { %2287 = vrcp.f32 %v540_v9  ;;  %v464_v23 = vadd.f32 %v463_v10, %v2902_v4  ;;  %v478_v10 = vmax.f32 %v448_v17, 0.0  ;;  %v2221_v17 = vld [vmem:[#allocation5 + $0x1d0] ss:$8 sps:$4 sm:$0xff]  }
 0x177   : > { %v2276_v24 = vpop.eup %2275  ;;  %2289 = vpow2.f32 %v1964_v5  ;;  %797 = vmatmul.mubr.bf16.gmra.mxu1 %v628_v8  ;;  %v3001_v11 = vadd.f32 %v600_v63, %v2855_v26  ;;  %v458_v63 = vadd.f32 %v2978_v51, %v2919_v49 }
 0x178   : > { %v2278_v15 = vpop.eup %2277  ;;  %v541_v41 = vadd.f32 1.0, %v2276_v24  ;;  %v1965_v34 = vmul.f32 -1.442695, %v464_v23  ;;  %806 = vmatprep.mubr.bf16.mxu1 %v2652_v0 }
 0x179   : > { %v601_v37 = vmul.f32 %v2278_v15, %v585_v14  ;;  %v590_v14 = vsub.f32 %v478_v10, %v2882_v35 }
 0x17a   : > { %2291 = vrcp.f32 %v541_v41  ;;  %v480_v41 = vmax.f32 %v458_v63, 0.0 }
 0x17b   : > { %v2280_v44 = vpop.eup %2279  ;;  %2293 = vpow2.f32 %v1965_v34  ;;  %v3004_v4 = vadd.f32 %v601_v37, %v2858_v27 }
 0x17c   : > { %v2282_v45 = vpop.eup %2281  ;;  %v602_v26 = vmul.f32 %v2280_v44, %v586_v46 }
 0x17d   : > { %v542_v47 = vadd.f32 1.0, %v2282_v45  ;;  %v629_v50 = vpack.c.bf16 %v3004_v4, %v3001_v11  ;;  %v592_v45 = vsub.f32 %v480_v41, %v2891_v38 }
 0x17e   : > { %v3016_v58 = vadd.f32 %v602_v26, %v2864_v29  ;;  %v2205_v26 = vld [vmem:[#allocation5 + $0x134] ss:$8 sps:$4 sm:$0xff]  }
 0x17f   : > { %v2284_v16 = vpop.eup %2283  ;;  %2295 = vrcp.f32 %v542_v47  ;;  %807 = vmatmul.mubr.bf16.gmra.mxu1 %v629_v50 }
 0x180   : > { %v2286_v27 = vpop.eup %2285  ;;  %816 = vmatprep.mubr.bf16.mxu1 %v2652_v0  ;;  %v603_v48 = vmul.f32 %v2284_v16, %v587_v12  ;;  %v2202_v12 = vld [vmem:[#allocation5 + $0x144] ss:$8 sps:$4 sm:$0xff]   ;;  %v2203_v16 = vld [vmem:[#allocation5 + $0x130] ss:$8 sps:$4 sm:$0xff]  }
 0x181   : > { %v543_v57 = vadd.f32 1.0, %v2286_v27  ;;  %1141 = vmatprep.subr.bf16.mxu0 %v2202_v12  ;;  %v2208_v27 = vld [vmem:[#allocation5 + $0x124] ss:$8 sps:$4 sm:$0xff]  }
 0x182   : > { %v3019_v59 = vadd.f32 %v603_v48, %v2867_v30  ;;  %v452_v30 = vadd.f32 %v2964_v25, %v2919_v49  ;;  %1142 = vmatpush1.bf16.msra.mxu0 %v2200_v20  ;;  %v2214_v48 = vld [vmem:[#allocation5 + $0x104] ss:$8 sps:$4 sm:$0xff]  }
 0x183   : > { %v2288_v60 = vpop.eup %2287  ;;  %2297 = vrcp.f32 %v543_v57  ;;  %1143 = vmatprep.subr.bf16.mxu0 %v2205_v26  ;;  %v2212_v57 = vld [vmem:[#allocation5 + $0x100] ss:$8 sps:$4 sm:$0xff]  }
 0x184   : > { %v2290_v56 = vpop.eup %2289  ;;  %v630_v62 = vpack.c.bf16 %v3019_v59, %v3016_v58  ;;  %v604_v9 = vmul.f32 %v2288_v60, %v588_v61  ;;  %v479_v23 = vmax.f32 %v452_v30, 0.0  ;;  %v2217_v60 = vld [vmem:[#allocation5 + $0x1f4] ss:$8 sps:$4 sm:$0xff]   ;;  %v2218_v61 = vld [vmem:[#allocation5 + $0x1e0] ss:$8 sps:$4 sm:$0xff]  }
 0x185   : > { %v544_v3 = vadd.f32 1.0, %v2290_v56  ;;  %v2220_v56 = vld [vmem:[#allocation5 + $0x1e4] ss:$8 sps:$4 sm:$0xff]   ;;  %1526 = vmatprep.subr.bf16.mxu1 %v2217_v60 }
 0x186   : > { %v3031_v13 = vadd.f32 %v604_v9, %v2873_v32  ;;  %v591_v15 = vsub.f32 %v479_v23, %v2885_v36  ;;  %v462_v32 = vadd.f32 %v2982_v55, %v2919_v49  ;;  %1144 = vmatpush1.bf16.msra.mxu0 %v2203_v16  ;;  %1527 = vmatpush1.bf16.msra.mxu1 %v2215_v43 }
 0x187   : > { %v2292_v29 = vpop.eup %2291  ;;  %2299 = vrcp.f32 %v544_v3  ;;  %817 = vmatmul.mubr.bf16.gmra.mxu1 %v630_v62  ;;  %1145 = vmatprep.subr.bf16.mxu0 %v2208_v27  ;;  %v2223_v62 = vld [vmem:[#allocation5 + $0x1d4] ss:$8 sps:$4 sm:$0xff]   ;;  %v652_v3 = vld [vmem:[#allocation7 + $0x2] sm:$0x3] }
 0x188   : > { %v2294_v5 = vpop.eup %2293  ;;  %826 = vmatprep.mubr.bf16.mxu1 %v2652_v0  ;;  %v605_v28 = vmul.f32 %v2292_v29, %v589_v6  ;;  %v481_v37 = vmax.f32 %v462_v32, 0.0  ;;  %1528 = vmatprep.subr.bf16.mxu1 %v2220_v56  ;;  %v3066_v6 = vrot.slane %v652_v3, %v2899_v2 }
 0x189   : > { %v545_v8 = vadd.f32 1.0, %v2294_v5 }
 0x18a   : > { %v3034_v7 = vadd.f32 %v605_v28, %v2876_v33  ;;  %v593_v55 = vsub.f32 %v481_v37, %v2894_v39  ;;  %1529 = vmatpush1.bf16.msra.mxu1 %v2218_v61 }
 0x18b   : > { %2301 = vrcp.f32 %v545_v8  ;;  %1530 = vmatprep.subr.bf16.mxu1 %v2223_v62 }
 0x18c   : > { %v2296_v24 = vpop.eup %2295  ;;  %v631_v25 = vpack.c.bf16 %v3034_v7, %v3031_v13 }
 0x18d   : > { %v606_v22 = vmul.f32 %v2296_v24, %v590_v14 }
 0x18e   : > { %1531 = vmatpush1.bf16.msra.mxu1 %v2221_v17 }
 0x18f   : > { %827 = vmatmul.mubr.bf16.gmra.mxu1 %v631_v25  ;;  %v3046_v40 = vadd.f32 %v606_v22, %v2882_v35 }
 0x190   : > { %v2298_v33 = vpop.eup %2297  ;;  %836 = vmatprep.mubr.bf16.mxu1 %v2652_v0 }
 0x191   : > { %v607_v34 = vmul.f32 %v2298_v33, %v591_v15 }
 0x193   : > { %v3049_v44 = vadd.f32 %v607_v34, %v2885_v36 }
 0x194   : > { %v2300_v51 = vpop.eup %2299 }
 0x195   : > { %v632_v49 = vpack.c.bf16 %v3049_v44, %v3046_v40  ;;  %v608_v46 = vmul.f32 %v2300_v51, %v592_v45 }
 0x197   : > { %837 = vmatmul.mubr.bf16.gmra.mxu1 %v632_v49  ;;  %v3057_v35 = vadd.f32 %v608_v46, %v2891_v38  ;;  %v2206_v38 = vld [vmem:[#allocation5 + $0x120] ss:$8 sps:$4 sm:$0xff]  }
 0x198   : > { %v2302_v21 = vpop.eup %2301  ;;  %846 = vmatprep.mubr.bf16.mxu1 %v2652_v0  ;;  %1146 = vmatpush1.bf16.msra.mxu0 %v2206_v38 }
 0x199   : > { %v609_v47 = vmul.f32 %v2302_v21, %v593_v55 }
 0x19b   : > { %v3060_v36 = vadd.f32 %v609_v47, %v2894_v39  ;;  %v2211_v39 = vld [vmem:[#allocation5 + $0x114] ss:$8 sps:$4 sm:$0xff]  }
 0x19c   : > { %1147 = vmatprep.subr.bf16.mxu0 %v2211_v39 }
 0x19d   : > { %v633_v50 = vpack.c.bf16 %v3060_v36, %v3057_v35  ;;  %1148 = vmatpush1.bf16.msra.mxu0 %v2209_v54 }
 0x19e   : > { %1149 = vmatprep.subr.bf16.mxu0 %v2214_v48 }
 0x19f   : > { %847 = vmatmul.mubr.bf16.gmra.mxu1 %v633_v50  ;;  %v3079_v50 = vrot.slane %v652_v3, %v2913_v42 }
 0x1a0   : > { %1558 = vmatprep.mubr.bf16.mxu1 %v2652_v0 }
 0x1a1   : > { %1150 = vmatpush1.bf16.msra.mxu0 %v2212_v57 }
 0x226   : > { %v778_v9 = vpop.f32.mrf.mxu1 }
 0x227   : > { %v779_v39 = vadd.f32 %v778_v9, %v3079_v50 }
 0x228   : > { %v780_v29 = vpop.f32.mrf.mxu1 }
 0x229   : > { %v781_v30 = vadd.f32 %v780_v29, %v3066_v6  ;;  %v857_v62 = vmax.f32 %v779_v39, 0.0 }
 0x22a   : > { %v782_v5 = vpop.f32.mrf.mxu1 }
 0x22b   : > { %v1982_v28 = vmul.f32 -1.442695, %v781_v30  ;;  %v783_v43 = vadd.f32 %v782_v5, %v3079_v50  ;;  %v969_v5 = vsub.f32 %v857_v62, %v2941_v52 }
 0x22c   : > { %v784_v10 = vpop.f32.mrf.mxu1 }
 0x22d   : > { %2303 = vpow2.f32 %v1982_v28  ;;  %v785_v8 = vadd.f32 %v784_v10, %v3066_v6  ;;  %v858_v30 = vmax.f32 %v783_v43, 0.0 }
 0x22e   : > { %v788_v24 = vpop.f32.mrf.mxu1 }
 0x22f   : > { %v1983_v23 = vmul.f32 -1.442695, %v785_v8 }
 0x230   : > { %v790_v25 = vpop.f32.mrf.mxu1 }
 0x231   : > { %2305 = vpow2.f32 %v1983_v23  ;;  %v791_v14 = vadd.f32 %v790_v25, %v3066_v6  ;;  %v789_v25 = vadd.f32 %v788_v24, %v3079_v50 }
 0x232   : > { %v792_v63 = vpop.f32.mrf.mxu1 }
 0x233   : > { %v1984_v15 = vmul.f32 -1.442695, %v791_v14 }
 0x234   : > { %v794_v32 = vpop.f32.mrf.mxu1 }
 0x235   : > { %2307 = vpow2.f32 %v1984_v15  ;;  %v795_v22 = vadd.f32 %v794_v32, %v3066_v6  ;;  %v970_v32 = vsub.f32 %v858_v30, %v2944_v53 }
 0x237   : > { %v3072_v33 = vpop.f32.mrf.mxu1  ;;  %v1985_v41 = vmul.f32 -1.442695, %v795_v22 }
 0x239   : > { %v800_v34 = vpop.f32.mrf.mxu1  ;;  %2309 = vpow2.f32 %v1985_v41 }
 0x23a   : > { %v2304_v37 = vpop.eup %2303  ;;  %v801_v51 = vadd.f32 %v800_v34, %v3066_v6 }
 0x23b   : > { %v921_v45 = vadd.f32 1.0, %v2304_v37  ;;  %v3075_v49 = vpop.f32.mrf.mxu1  ;;  %v793_v37 = vadd.f32 %v792_v63, %v3079_v50 }
 0x23c   : > { %v1986_v55 = vmul.f32 -1.442695, %v801_v51 }
 0x23d   : > { %2311 = vrcp.f32 %v921_v45  ;;  %v804_v46 = vpop.f32.mrf.mxu1 }
 0x23e   : > { %v2306_v21 = vpop.eup %2305  ;;  %2313 = vpow2.f32 %v1986_v55  ;;  %v805_v47 = vadd.f32 %v804_v46, %v3066_v6 }
 0x23f   : > { %v922_v12 = vadd.f32 1.0, %v2306_v21  ;;  %v3081_v20 = vpop.f32.mrf.mxu1  ;;  %v859_v21 = vmax.f32 %v789_v25, 0.0 }
 0x240   : > { %v1987_v26 = vmul.f32 -1.442695, %v805_v47 }
 0x241   : > { %2315 = vrcp.f32 %v922_v12  ;;  %v810_v16 = vpop.f32.mrf.mxu1  ;;  %v971_v43 = vsub.f32 %v859_v21, %v2967_v31 }
 0x242   : > { %2317 = vpow2.f32 %v1987_v26  ;;  %v811_v27 = vadd.f32 %v810_v16, %v3066_v6  ;;  %v2308_v38 = vpop.eup %2307 }
 0x243   : > { %v3085_v54 = vpop.f32.mrf.mxu1  ;;  %v923_v48 = vadd.f32 1.0, %v2308_v38 }
 0x244   : > { %v1988_v57 = vmul.f32 -1.442695, %v811_v27  ;;  %v860_v27 = vmax.f32 %v793_v37, 0.0 }
 0x245   : > { %v814_v60 = vpop.f32.mrf.mxu1  ;;  %2319 = vrcp.f32 %v923_v48 }
 0x246   : > { %v815_v56 = vadd.f32 %v814_v60, %v3066_v6  ;;  %v2310_v61 = vpop.eup %2309  ;;  %2321 = vpow2.f32 %v1988_v57  ;;  %v972_v62 = vsub.f32 %v860_v27, %v2962_v19 }
 0x247   : > { %v3089_v17 = vpop.f32.mrf.mxu1  ;;  %v924_v3 = vadd.f32 1.0, %v2310_v61 }
 0x248   : > { %v1989_v29 = vmul.f32 -1.442695, %v815_v56 }
 0x249   : > { %v820_v28 = vpop.f32.mrf.mxu1  ;;  %2323 = vrcp.f32 %v924_v3 }
 0x24a   : > { %v2312_v9 = vpop.eup %2311  ;;  %v821_v10 = vadd.f32 %v820_v28, %v3066_v6  ;;  %2325 = vpow2.f32 %v1989_v29 }
 0x24b   : > { %v2314_v8 = vpop.eup %2313  ;;  %v3093_v23 = vpop.f32.mrf.mxu1  ;;  %v985_v41 = vmul.f32 %v2312_v9, %v969_v5 }
 0x24c   : > { %v925_v14 = vadd.f32 1.0, %v2314_v8  ;;  %v1990_v15 = vmul.f32 -1.442695, %v821_v10 }
 0x24d   : > { %v824_v22 = vpop.f32.mrf.mxu1  ;;  %v3102_v26 = vadd.f32 %v985_v41, %v2941_v52  ;;  %v799_v52 = vadd.f32 %v3072_v33, %v3079_v50 }
 0x24e   : > { %v2316_v34 = vpop.eup %2315  ;;  %2327 = vrcp.f32 %v925_v14  ;;  %v825_v51 = vadd.f32 %v824_v22, %v3066_v6 }
 0x24f   : > { %v2318_v45 = vpop.eup %2317  ;;  %2329 = vpow2.f32 %v1990_v15  ;;  %v3099_v55 = vpop.f32.mrf.mxu1  ;;  %v986_v46 = vmul.f32 %v2316_v34, %v970_v32  ;;  %v861_v8 = vmax.f32 %v799_v52, 0.0 }
 0x250   : > { %v926_v47 = vadd.f32 1.0, %v2318_v45  ;;  %v1991_v24 = vmul.f32 -1.442695, %v825_v51 }
 0x251   : > { %v830_v12 = vpop.f32.mrf.mxu1  ;;  %v3105_v16 = vadd.f32 %v986_v46, %v2944_v53  ;;  %v803_v53 = vadd.f32 %v3075_v49, %v3079_v50  ;;  %v973_v45 = vsub.f32 %v861_v8, %v2985_v1  ;;  %v809_v46 = vadd.f32 %v3081_v20, %v3079_v50 }
 0x252   : > { %2331 = vrcp.f32 %v926_v47  ;;  %v831_v63 = vadd.f32 %v830_v12, %v3066_v6  ;;  %v2320_v38 = vpop.eup %2319  ;;  %v813_v12 = vadd.f32 %v3085_v54, %v3079_v50 }
 0x253   : > { %2333 = vpow2.f32 %v1991_v24  ;;  %v3108_v39 = vpop.f32.mrf.mxu1  ;;  %v1017_v48 = vpack.c.bf16 %v3105_v16, %v3102_v26  ;;  %v2322_v57 = vpop.eup %2321  ;;  %v987_v29 = vmul.f32 %v2320_v38, %v971_v43  ;;  %v862_v49 = vmax.f32 %v803_v53, 0.0 }
 0x254   : > { %v1992_v60 = vmul.f32 -1.442695, %v831_v63  ;;  %v927_v56 = vadd.f32 1.0, %v2322_v57  ;;  %v863_v57 = vmax.f32 %v809_v46, 0.0  ;;  %v864_v54 = vmax.f32 %v813_v12, 0.0 }
 0x255   : > { %v834_v61 = vpop.f32.mrf.mxu1  ;;  %1168 = vmatmul.mubr.bf16.vlgmr.msra.gmra.mxu0 %v1017_v48  ;;  %v3124_v15 = vadd.f32 %v987_v29, %v2967_v31  ;;  %v974_v47 = vsub.f32 %v862_v49, %v2988_v18 }
 0x256   : > { %2335 = vpow2.f32 %v1992_v60  ;;  %v835_v3 = vadd.f32 %v834_v61, %v3066_v6  ;;  %1177 = vmatprep.mubr.bf16.mxu0 %v2652_v0  ;;  %v2324_v30 = vpop.eup %2323 }
 0x257   : > { %2337 = vrcp.f32 %v927_v56  ;;  %v3120_v28 = vpop.f32.mrf.mxu1  ;;  %v2326_v9 = vpop.eup %2325  ;;  %v988_v10 = vmul.f32 %v2324_v30, %v972_v62 }
 0x258   : > { %v1993_v33 = vmul.f32 -1.442695, %v835_v3  ;;  %v928_v5 = vadd.f32 1.0, %v2326_v9  ;;  %v975_v9 = vsub.f32 %v863_v57, %v3001_v11 }
 0x259   : > { %v840_v25 = vpop.f32.mrf.mxu1  ;;  %v3127_v32 = vadd.f32 %v988_v10, %v2962_v19 }
 0x25a   : > { %2339 = vpow2.f32 %v1993_v33  ;;  %v841_v14 = vadd.f32 %v840_v25, %v3066_v6  ;;  %v819_v33 = vadd.f32 %v3089_v17, %v3079_v50 }
 0x25b   : > { %v2328_v22 = vpop.eup %2327  ;;  %2341 = vrcp.f32 %v928_v5  ;;  %v3129_v41 = vpop.f32.mrf.mxu1  ;;  %v1018_v51 = vpack.c.bf16 %v3127_v32, %v3124_v15  ;;  %v976_v5 = vsub.f32 %v864_v54, %v3004_v4 }
 0x25c   : > { %v2330_v34 = vpop.eup %2329  ;;  %v1994_v37 = vmul.f32 -1.442695, %v841_v14  ;;  %v989_v63 = vmul.f32 %v2328_v22, %v973_v45  ;;  %v865_v17 = vmax.f32 %v819_v33, 0.0 }
 0x25d   : > { %v929_v21 = vadd.f32 1.0, %v2330_v34  ;;  %v844_v31 = vpop.f32.mrf.mxu1  ;;  %1178 = vmatmul.mubr.bf16.gmra.mxu0 %v1018_v51 }
 0x25e   : > { %2343 = vpow2.f32 %v1994_v37  ;;  %v845_v19 = vadd.f32 %v844_v31, %v3066_v6  ;;  %1187 = vmatprep.mubr.bf16.mxu0 %v2652_v0  ;;  %v3150_v62 = vadd.f32 %v989_v63, %v2985_v1  ;;  %v823_v1 = vadd.f32 %v3093_v23, %v3079_v50 }
 0x25f   : > { %v2332_v24 = vpop.eup %2331  ;;  %2345 = vrcp.f32 %v929_v21  ;;  %v3140_v27 = vpop.f32.mrf.mxu1  ;;  %v829_v21 = vadd.f32 %v3099_v55, %v3079_v50 }
 0x260   : > { %v2334_v38 = vpop.eup %2333  ;;  %v1995_v20 = vmul.f32 -1.442695, %v845_v19  ;;  %v990_v48 = vmul.f32 %v2332_v24, %v974_v47  ;;  %v866_v45 = vmax.f32 %v823_v1, 0.0  ;;  %v977_v47 = vsub.f32 %v865_v17, %v3016_v58 }
 0x261   : > { %v930_v43 = vadd.f32 1.0, %v2334_v38  ;;  %v850_v60 = vpop.f32.mrf.mxu1  ;;  %v833_v24 = vadd.f32 %v3108_v39, %v3079_v50  ;;  %v867_v38 = vmax.f32 %v829_v21, 0.0 }
 0x262   : > { %2347 = vpow2.f32 %v1995_v20  ;;  %v851_v52 = vadd.f32 %v850_v60, %v3066_v6  ;;  %v3145_v53 = vadd.f32 %v990_v48, %v2988_v18 }
 0x263   : > { %v2336_v56 = vpop.eup %2335  ;;  %2349 = vrcp.f32 %v930_v43  ;;  %v3147_v61 = vpop.f32.mrf.mxu1  ;;  %v868_v48 = vmax.f32 %v833_v24, 0.0  ;;  %v2224_v24 = vld [vmem:[#allocation5 + $0x1c0] ss:$8 sps:$4 sm:$0xff]  }
 0x264   : > { %v2338_v3 = vpop.eup %2337  ;;  %v931_v29 = vadd.f32 1.0, %v2336_v56  ;;  %v1996_v30 = vmul.f32 -1.442695, %v851_v52  ;;  %v1019_v18 = vpack.c.bf16 %v3145_v53, %v3150_v62  ;;  %v979_v52 = vsub.f32 %v867_v38, %v3031_v13  ;;  %v2230_v38 = vld [vmem:[#allocation5 + $0x1a0] ss:$8 sps:$4 sm:$0xff]  }
 0x265   : > { %v854_v10 = vpop.f32.mrf.mxu1  ;;  %v991_v25 = vmul.f32 %v2338_v3, %v975_v9  ;;  %v839_v56 = vadd.f32 %v3120_v28, %v3079_v50 }
 0x266   : > { %2351 = vrcp.f32 %v931_v29  ;;  %v855_v8 = vadd.f32 %v854_v10, %v3066_v6  ;;  %1188 = vmatmul.mubr.bf16.gmra.mxu0 %v1019_v18  ;;  %v980_v29 = vsub.f32 %v868_v48, %v3034_v7  ;;  %v1043_v48 = vld [vmem:[#allocation7 + $0x4] sm:$0x3] }
 0x267   : > { %v2340_v49 = vpop.eup %2339  ;;  %2353 = vpow2.f32 %v1996_v30  ;;  %1197 = vmatprep.mubr.bf16.mxu0 %v2652_v0  ;;  %v3163_v6 = vadd.f32 %v991_v25, %v3001_v11  ;;  %v978_v11 = vsub.f32 %v866_v45, %v3019_v59  ;;  %v843_v30 = vadd.f32 %v3129_v41, %v3079_v50 }
 0x268   : > { %v2342_v14 = vpop.eup %2341  ;;  %v932_v22 = vadd.f32 1.0, %v2340_v49  ;;  %v1997_v34 = vmul.f32 -1.442695, %v855_v8  ;;  %v869_v33 = vmax.f32 %v839_v56, 0.0  ;;  %v849_v25 = vadd.f32 %v3140_v27, %v3079_v50 }
 0x269   : > { %v992_v37 = vmul.f32 %v2342_v14, %v976_v5  ;;  %v870_v28 = vmax.f32 %v843_v30, 0.0 }
 0x26a   : > { %2355 = vrcp.f32 %v932_v22  ;;  %v981_v41 = vsub.f32 %v869_v33, %v3046_v40  ;;  %v871_v17 = vmax.f32 %v849_v25, 0.0 }
 0x26b   : > { %v2344_v51 = vpop.eup %2343  ;;  %2357 = vpow2.f32 %v1997_v34  ;;  %v3166_v46 = vadd.f32 %v992_v37, %v3004_v4  ;;  %v982_v14 = vsub.f32 %v870_v28, %v3049_v44 }
 0x26c   : > { %v2346_v23 = vpop.eup %2345  ;;  %v933_v31 = vadd.f32 1.0, %v2344_v51  ;;  %v983_v21 = vsub.f32 %v871_v17, %v3057_v35 }
 0x26d   : > { %v1020_v19 = vpack.c.bf16 %v3166_v46, %v3163_v6  ;;  %v993_v4 = vmul.f32 %v2346_v23, %v977_v47 }
 0x26e   : > { %2359 = vrcp.f32 %v933_v31 }
 0x26f   : > { %v2348_v12 = vpop.eup %2347  ;;  %1198 = vmatmul.mubr.bf16.gmra.mxu0 %v1020_v19  ;;  %v3178_v43 = vadd.f32 %v993_v4, %v3016_v58  ;;  %v2227_v4 = vld [vmem:[#allocation5 + $0x1b0] ss:$8 sps:$4 sm:$0xff]  }
 0x270   : > { %v2350_v63 = vpop.eup %2349  ;;  %v934_v20 = vadd.f32 1.0, %v2348_v12  ;;  %1207 = vmatprep.mubr.bf16.mxu0 %v2652_v0  ;;  %v2226_v12 = vld [vmem:[#allocation5 + $0x1c4] ss:$8 sps:$4 sm:$0xff]  }
 0x271   : > { %v994_v55 = vmul.f32 %v2350_v63, %v978_v11  ;;  %1532 = vmatprep.subr.bf16.mxu1 %v2226_v12  ;;  %v2229_v11 = vld [vmem:[#allocation5 + $0x1b4] ss:$8 sps:$4 sm:$0xff]   ;;  %v2232_v63 = vld [vmem:[#allocation5 + $0x1a4] ss:$8 sps:$4 sm:$0xff]  }
 0x272   : > { %2361 = vrcp.f32 %v934_v20  ;;  %1533 = vmatpush1.bf16.msra.mxu1 %v2224_v24  ;;  %v2233_v20 = vld [vmem:[#allocation5 + $0x190] ss:$8 sps:$4 sm:$0xff]  }
 0x273   : > { %v2352_v57 = vpop.eup %2351  ;;  %v3181_v39 = vadd.f32 %v994_v55, %v3019_v59  ;;  %1534 = vmatprep.subr.bf16.mxu1 %v2229_v11  ;;  %v2236_v55 = vld [vmem:[#allocation5 + $0x180] ss:$8 sps:$4 sm:$0xff]  }
 0x274   : > { %v2354_v60 = vpop.eup %2353  ;;  %v995_v58 = vmul.f32 %v2352_v57, %v979_v52  ;;  %v3227_v57 = vrot.slane %v1043_v48, %v2899_v2 }
 0x275   : > { %v935_v54 = vadd.f32 1.0, %v2354_v60  ;;  %v1021_v3 = vpack.c.bf16 %v3181_v39, %v3178_v43 }
 0x276   : > { %v3193_v8 = vadd.f32 %v995_v58, %v3031_v13  ;;  %v853_v13 = vadd.f32 %v3147_v61, %v3079_v50  ;;  %1535 = vmatpush1.bf16.msra.mxu1 %v2227_v4 }
 0x277   : > { %v2356_v9 = vpop.eup %2355  ;;  %2363 = vrcp.f32 %v935_v54  ;;  %1208 = vmatmul.mubr.bf16.gmra.mxu0 %v1021_v3  ;;  %1536 = vmatprep.subr.bf16.mxu1 %v2232_v63 }
 0x278   : > { %v2358_v59 = vpop.eup %2357  ;;  %1217 = vmatprep.mubr.bf16.mxu0 %v2652_v0  ;;  %v996_v10 = vmul.f32 %v2356_v9, %v980_v29  ;;  %v872_v45 = vmax.f32 %v853_v13, 0.0 }
 0x279   : > { %v936_v18 = vadd.f32 1.0, %v2358_v59 }
 0x27a   : > { %v3196_v49 = vadd.f32 %v996_v10, %v3034_v7  ;;  %v984_v50 = vsub.f32 %v872_v45, %v3060_v36  ;;  %1537 = vmatpush1.bf16.msra.mxu1 %v2230_v38 }
 0x27b   : > { %v2360_v5 = vpop.eup %2359  ;;  %2365 = vrcp.f32 %v936_v18 }
 0x27c   : > { %v1022_v1 = vpack.c.bf16 %v3196_v49, %v3193_v8  ;;  %v997_v22 = vmul.f32 %v2360_v5, %v981_v41 }
 0x27e   : > { %v3208_v37 = vadd.f32 %v997_v22, %v3046_v40 }
 0x27f   : > { %v2362_v34 = vpop.eup %2361  ;;  %1218 = vmatmul.mubr.bf16.gmra.mxu0 %v1022_v1 }
 0x280   : > { %1227 = vmatprep.mubr.bf16.mxu0 %v2652_v0  ;;  %v998_v7 = vmul.f32 %v2362_v34, %v982_v14 }
 0x282   : > { %v3211_v51 = vadd.f32 %v998_v7, %v3049_v44 }
 0x284   : > { %v2364_v27 = vpop.eup %2363  ;;  %v1023_v23 = vpack.c.bf16 %v3211_v51, %v3208_v37 }
 0x285   : > { %v999_v61 = vmul.f32 %v2364_v27, %v983_v21  ;;  %v3240_v21 = vrot.slane %v1043_v48, %v2913_v42 }
 0x287   : > { %1228 = vmatmul.mubr.bf16.gmra.mxu0 %v1023_v23  ;;  %v3219_v40 = vadd.f32 %v999_v61, %v3057_v35  ;;  %v2235_v35 = vld [vmem:[#allocation5 + $0x194] ss:$8 sps:$4 sm:$0xff]  }
 0x288   : > { %v2366_v31 = vpop.eup %2365  ;;  %1237 = vmatprep.mubr.bf16.mxu0 %v2652_v0  ;;  %1538 = vmatprep.subr.bf16.mxu1 %v2235_v35 }
 0x289   : > { %v1000_v47 = vmul.f32 %v2366_v31, %v984_v50  ;;  %1539 = vmatpush1.bf16.msra.mxu1 %v2233_v20 }
 0x28b   : > { %v3222_v44 = vadd.f32 %v1000_v47, %v3060_v36  ;;  %v2238_v36 = vld [vmem:[#allocation5 + $0x184] ss:$8 sps:$4 sm:$0xff]  }
 0x28c   : > { %1540 = vmatprep.subr.bf16.mxu1 %v2238_v36 }
 0x28d   : > { %v1024_v19 = vpack.c.bf16 %v3222_v44, %v3219_v40  ;;  %1541 = vmatpush1.bf16.msra.mxu1 %v2236_v55 }
 0x28f   : > { %1238 = vmatmul.mubr.bf16.gmra.mxu0 %v1024_v19 }
 0x315   : > { %v1169_v60 = vpop.f32.mrf.mxu0 }
 0x316   : > { %v1170_v24 = vadd.f32 %v1169_v60, %v3240_v21 }
 0x317   : > { %v1171_v52 = vpop.f32.mrf.mxu0 }
 0x318   : > { %v1172_v56 = vadd.f32 %v1171_v52, %v3227_v57  ;;  %v1248_v36 = vmax.f32 %v1170_v24, 0.0 }
 0x319   : > { %v1173_v54 = vpop.f32.mrf.mxu0 }
 0x31a   : > { %v2014_v3 = vmul.f32 -1.442695, %v1172_v56  ;;  %v1174_v4 = vadd.f32 %v1173_v54, %v3240_v21 }
 0x31b   : > { %v1175_v29 = vpop.f32.mrf.mxu0 }
 0x31c   : > { %2367 = vpow2.f32 %v2014_v3  ;;  %v1176_v30 = vadd.f32 %v1175_v29, %v3227_v57  ;;  %v1249_v52 = vmax.f32 %v1174_v4, 0.0 }
 0x31d   : > { %v1179_v9 = vpop.f32.mrf.mxu0 }
 0x31e   : > { %v2015_v58 = vmul.f32 -1.442695, %v1176_v30  ;;  %v1360_v30 = vsub.f32 %v1248_v36, %v3102_v26 }
 0x31f   : > { %v1181_v59 = vpop.f32.mrf.mxu0 }
 0x320   : > { %2369 = vpow2.f32 %v2015_v58  ;;  %v1182_v33 = vadd.f32 %v1181_v59, %v3227_v57  ;;  %v1180_v58 = vadd.f32 %v1179_v9, %v3240_v21 }
 0x321   : > { %v1183_v10 = vpop.f32.mrf.mxu0 }
 0x322   : > { %v2016_v18 = vmul.f32 -1.442695, %v1182_v33  ;;  %v1361_v33 = vsub.f32 %v1249_v52, %v3105_v16 }
 0x323   : > { %v1185_v28 = vpop.f32.mrf.mxu0 }
 0x324   : > { %2371 = vpow2.f32 %v2016_v18  ;;  %v1186_v5 = vadd.f32 %v1185_v28, %v3227_v57 }
 0x326   : > { %v2017_v41 = vmul.f32 -1.442695, %v1186_v5  ;;  %v3233_v1 = vpop.f32.mrf.mxu0 }
 0x328   : > { %2373 = vpow2.f32 %v2017_v41  ;;  %v1191_v14 = vpop.f32.mrf.mxu0  ;;  %v1184_v41 = vadd.f32 %v1183_v10, %v3240_v21 }
 0x329   : > { %v2368_v25 = vpop.eup %2367  ;;  %v1192_v34 = vadd.f32 %v1191_v14, %v3227_v57 }
 0x32a   : > { %v1312_v22 = vadd.f32 1.0, %v2368_v25  ;;  %v3236_v13 = vpop.f32.mrf.mxu0 }
 0x32b   : > { %v2018_v7 = vmul.f32 -1.442695, %v1192_v34  ;;  %v1194_v52 = vadd.f32 %v3236_v13, %v3240_v21 }
 0x32c   : > { %2375 = vrcp.f32 %v1312_v22  ;;  %v1195_v45 = vpop.f32.mrf.mxu0 }
 0x32d   : > { %v2370_v17 = vpop.eup %2369  ;;  %2377 = vpow2.f32 %v2018_v7  ;;  %v1196_v23 = vadd.f32 %v1195_v45, %v3227_v57  ;;  %v1253_v13 = vmax.f32 %v1194_v52, 0.0 }
 0x32e   : > { %v1313_v27 = vadd.f32 1.0, %v2370_v17  ;;  %v1250_v17 = vmax.f32 %v1180_v58, 0.0 }
 0x32f   : > { %v3242_v50 = vpop.f32.mrf.mxu0  ;;  %v2019_v61 = vmul.f32 -1.442695, %v1196_v23  ;;  %v1251_v23 = vmax.f32 %v1184_v41, 0.0 }
 0x330   : > { %2379 = vrcp.f32 %v1313_v27 }
 0x331   : > { %v1201_v31 = vpop.f32.mrf.mxu0  ;;  %v2372_v47 = vpop.eup %2371  ;;  %2381 = vpow2.f32 %v2019_v61 }
 0x332   : > { %v1202_v19 = vadd.f32 %v1201_v31, %v3227_v57  ;;  %v1314_v12 = vadd.f32 1.0, %v2372_v47 }
 0x333   : > { %v3246_v11 = vpop.f32.mrf.mxu0 }
 0x334   : > { %v2020_v63 = vmul.f32 -1.442695, %v1202_v19  ;;  %2383 = vrcp.f32 %v1314_v12  ;;  %v1362_v12 = vsub.f32 %v1250_v17, %v3124_v15 }
 0x335   : > { %v1205_v38 = vpop.f32.mrf.mxu0  ;;  %v2374_v35 = vpop.eup %2373 }
 0x336   : > { %2385 = vpow2.f32 %v2020_v63  ;;  %v1206_v20 = vadd.f32 %v1205_v38, %v3227_v57  ;;  %v1315_v55 = vadd.f32 1.0, %v2374_v35 }
 0x337   : > { %v3250_v48 = vpop.f32.mrf.mxu0 }
 0x338   : > { %v2021_v56 = vmul.f32 -1.442695, %v1206_v20  ;;  %2387 = vrcp.f32 %v1315_v55 }
 0x339   : > { %v1211_v60 = vpop.f32.mrf.mxu0  ;;  %v2376_v3 = vpop.eup %2375 }
 0x33a   : > { %2389 = vpow2.f32 %v2021_v56  ;;  %v1212_v29 = vadd.f32 %v1211_v60, %v3227_v57  ;;  %v2378_v54 = vpop.eup %2377  ;;  %v1376_v14 = vmul.f32 %v2376_v3, %v1360_v30 }
 0x33b   : > { %v3255_v59 = vpop.f32.mrf.mxu0  ;;  %v1316_v18 = vadd.f32 1.0, %v2378_v54 }
 0x33c   : > { %v2022_v28 = vmul.f32 -1.442695, %v1212_v29  ;;  %v3263_v31 = vadd.f32 %v1376_v14, %v3102_v26  ;;  %v1190_v26 = vadd.f32 %v3233_v1, %v3240_v21 }
 0x33d   : > { %v2380_v5 = vpop.eup %2379  ;;  %v1215_v25 = vpop.f32.mrf.mxu0  ;;  %2391 = vrcp.f32 %v1316_v18 }
 0x33e   : > { %v1216_v22 = vadd.f32 %v1215_v25, %v3227_v57  ;;  %v1377_v34 = vmul.f32 %v2380_v5, %v1361_v33  ;;  %v2382_v7 = vpop.eup %2381  ;;  %2393 = vpow2.f32 %v2022_v28  ;;  %v1252_v29 = vmax.f32 %v1190_v26, 0.0 }
 0x33f   : > { %v3260_v45 = vpop.f32.mrf.mxu0  ;;  %v1317_v9 = vadd.f32 1.0, %v2382_v7 }
 0x340   : > { %v2023_v27 = vmul.f32 -1.442695, %v1216_v22  ;;  %v3266_v10 = vadd.f32 %v1377_v34, %v3105_v16  ;;  %v1363_v16 = vsub.f32 %v1251_v23, %v3127_v32  ;;  %v1364_v22 = vsub.f32 %v1252_v29, %v3150_v62 }
 0x341   : > { %v1221_v61 = vpop.f32.mrf.mxu0  ;;  %v2384_v47 = vpop.eup %2383  ;;  %2395 = vrcp.f32 %v1317_v9  ;;  %v1365_v9 = vsub.f32 %v1253_v13, %v3145_v53  ;;  %v1214_v13 = vadd.f32 %v3255_v59, %v3240_v21 }
 0x342   : > { %v1222_v19 = vadd.f32 %v1221_v61, %v3227_v57  ;;  %2397 = vpow2.f32 %v2023_v27  ;;  %v1408_v63 = vpack.c.bf16 %v3266_v10, %v3263_v31  ;;  %v1378_v36 = vmul.f32 %v2384_v47, %v1362_v12 }
 0x343   : > { %v2386_v24 = vpop.eup %2385  ;;  %v3270_v4 = vpop.f32.mrf.mxu0 }
 0x344   : > { %v1318_v38 = vadd.f32 1.0, %v2386_v24  ;;  %v2024_v35 = vmul.f32 -1.442695, %v1222_v19  ;;  %1559 = vmatmul.mubr.bf16.vlgmr.msra.gmra.mxu1 %v1408_v63  ;;  %v3284_v33 = vadd.f32 %v1378_v36, %v3124_v15  ;;  %v1200_v15 = vadd.f32 %v3242_v50, %v3240_v21 }
 0x345   : > { %v1225_v20 = vpop.f32.mrf.mxu0  ;;  %v2388_v55 = vpop.eup %2387  ;;  %1568 = vmatprep.mubr.bf16.mxu1 %v2652_v0 }
 0x346   : > { %2399 = vrcp.f32 %v1318_v38  ;;  %v1226_v56 = vadd.f32 %v1225_v20, %v3227_v57  ;;  %v1379_v1 = vmul.f32 %v2388_v55, %v1363_v16  ;;  %v1254_v19 = vmax.f32 %v1200_v15, 0.0 }
 0x347   : > { %v2390_v60 = vpop.eup %2389  ;;  %2401 = vpow2.f32 %v2024_v35  ;;  %v3281_v3 = vpop.f32.mrf.mxu0 }
 0x348   : > { %v1319_v54 = vadd.f32 1.0, %v2390_v60  ;;  %v2025_v30 = vmul.f32 -1.442695, %v1226_v56  ;;  %v3287_v18 = vadd.f32 %v1379_v1, %v3127_v32  ;;  %v1204_v32 = vadd.f32 %v3246_v11, %v3240_v21 }
 0x349   : > { %v1231_v58 = vpop.f32.mrf.mxu0  ;;  %v1366_v52 = vsub.f32 %v1254_v19, %v3163_v6  ;;  %v1210_v1 = vadd.f32 %v3250_v48, %v3240_v21 }
 0x34a   : > { %2403 = vrcp.f32 %v1319_v54  ;;  %v1232_v28 = vadd.f32 %v1231_v58, %v3227_v57  ;;  %v2392_v5 = vpop.eup %2391  ;;  %v1409_v25 = vpack.c.bf16 %v3287_v18, %v3284_v33  ;;  %v1255_v11 = vmax.f32 %v1204_v32, 0.0 }
 0x34b   : > { %2405 = vpow2.f32 %v2025_v30  ;;  %v3290_v41 = vpop.f32.mrf.mxu0  ;;  %v2394_v14 = vpop.eup %2393  ;;  %v1380_v23 = vmul.f32 %v2392_v5, %v1364_v22  ;;  %v1256_v48 = vmax.f32 %v1210_v1, 0.0 }
 0x34c   : > { %v2026_v34 = vmul.f32 -1.442695, %v1232_v28  ;;  %v1320_v7 = vadd.f32 1.0, %v2394_v14  ;;  %1569 = vmatmul.mubr.bf16.gmra.mxu1 %v1409_v25  ;;  %v1367_v54 = vsub.f32 %v1255_v11, %v3166_v46 }
 0x34d   : > { %v1235_v17 = vpop.f32.mrf.mxu0  ;;  %1578 = vmatprep.mubr.bf16.mxu1 %v2652_v0  ;;  %v3306_v35 = vadd.f32 %v1380_v23, %v3150_v62 }
 0x34e   : > { %2407 = vpow2.f32 %v2026_v34  ;;  %v1236_v27 = vadd.f32 %v1235_v17, %v3227_v57  ;;  %v2396_v61 = vpop.eup %2395  ;;  %v1257_v34 = vmax.f32 %v1214_v13, 0.0  ;;  %v1368_v17 = vsub.f32 %v1256_v48, %v3178_v43 }
 0x34f   : > { %2409 = vrcp.f32 %v1320_v7  ;;  %v3302_v47 = vpop.f32.mrf.mxu0  ;;  %v2398_v50 = vpop.eup %2397  ;;  %v1381_v12 = vmul.f32 %v2396_v61, %v1365_v9  ;;  %v1220_v9 = vadd.f32 %v3260_v45, %v3240_v21 }
 0x350   : > { %v2027_v24 = vmul.f32 -1.442695, %v1236_v27  ;;  %v1321_v63 = vadd.f32 1.0, %v2398_v50  ;;  %v1369_v27 = vsub.f32 %v1257_v34, %v3181_v39 }
 0x351   : > { %v1241_v26 = vpop.f32.mrf.mxu0  ;;  %v3309_v16 = vadd.f32 %v1381_v12, %v3145_v53  ;;  %v1258_v19 = vmax.f32 %v1220_v9, 0.0 }
 0x352   : > { %2411 = vpow2.f32 %v2027_v24  ;;  %v1242_v38 = vadd.f32 %v1241_v26, %v3227_v57 }
 0x353   : > { %v2400_v20 = vpop.eup %2399  ;;  %2413 = vrcp.f32 %v1321_v63  ;;  %v3311_v36 = vpop.f32.mrf.mxu0  ;;  %v1410_v60 = vpack.c.bf16 %v3309_v16, %v3306_v35 }
 0x354   : > { %v2402_v55 = vpop.eup %2401  ;;  %v2028_v56 = vmul.f32 -1.442695, %v1242_v38  ;;  %v1382_v30 = vmul.f32 %v2400_v20, %v1366_v52  ;;  %v1370_v20 = vsub.f32 %v1258_v19, %v3193_v8  ;;  %v1234_v52 = vadd.f32 %v3290_v41, %v3240_v21 }
 0x355   : > { %v1322_v29 = vadd.f32 1.0, %v2402_v55  ;;  %v1245_v62 = vpop.f32.mrf.mxu0  ;;  %1579 = vmatmul.mubr.bf16.gmra.mxu1 %v1410_v60 }
 0x356   : > { %2415 = vpow2.f32 %v2028_v56  ;;  %v1246_v53 = vadd.f32 %v1245_v62, %v3227_v57  ;;  %1588 = vmatprep.mubr.bf16.mxu1 %v2652_v0  ;;  %v3324_v22 = vadd.f32 %v1382_v30, %v3163_v6  ;;  %v1261_v62 = vmax.f32 %v1234_v52, 0.0 }
 0x357   : > { %v2404_v58 = vpop.eup %2403  ;;  %2417 = vrcp.f32 %v1322_v29 }
 0x358   : > { %v2406_v28 = vpop.eup %2405  ;;  %v2029_v5 = vmul.f32 -1.442695, %v1246_v53  ;;  %v1383_v25 = vmul.f32 %v2404_v58, %v1367_v54  ;;  %v1240_v58 = vadd.f32 %v3302_v47, %v3240_v21 }
 0x359   : > { %v1323_v14 = vadd.f32 1.0, %v2406_v28  ;;  %v1373_v28 = vsub.f32 %v1261_v62, %v3211_v51 }
 0x35a   : > { %2419 = vpow2.f32 %v2029_v5  ;;  %v3327_v57 = vadd.f32 %v1383_v25, %v3166_v46  ;;  %v1224_v46 = vadd.f32 %v3270_v4, %v3240_v21  ;;  %v1230_v4 = vadd.f32 %v3281_v3, %v3240_v21 }
 0x35b   : > { %v2408_v15 = vpop.eup %2407  ;;  %2421 = vrcp.f32 %v1323_v14  ;;  %v1244_v5 = vadd.f32 %v3311_v36, %v3240_v21 }
 0x35c   : > { %v2410_v32 = vpop.eup %2409  ;;  %v1324_v59 = vadd.f32 1.0, %v2408_v15  ;;  %v1411_v7 = vpack.c.bf16 %v3327_v57, %v3324_v22  ;;  %v1259_v11 = vmax.f32 %v1224_v46, 0.0  ;;  %v1260_v1 = vmax.f32 %v1230_v4, 0.0 }
 0x35d   : > { %v1384_v23 = vmul.f32 %v2410_v32, %v1368_v17  ;;  %v1263_v14 = vmax.f32 %v1244_v5, 0.0 }
 0x35e   : > { %2423 = vrcp.f32 %v1324_v59  ;;  %1589 = vmatmul.mubr.bf16.gmra.mxu1 %v1411_v7  ;;  %v1372_v30 = vsub.f32 %v1260_v1, %v3208_v37 }
 0x35f   : > { %v2412_v6 = vpop.eup %2411  ;;  %1598 = vmatprep.mubr.bf16.mxu1 %v2652_v0  ;;  %v3339_v45 = vadd.f32 %v1384_v23, %v3178_v43  ;;  %v1371_v43 = vsub.f32 %v1259_v11, %v3196_v49  ;;  %v1375_v36 = vsub.f32 %v1263_v14, %v3222_v44 }
 0x360   : > { %v2414_v61 = vpop.eup %2413  ;;  %v1325_v50 = vadd.f32 1.0, %v2412_v6  ;;  %v1434_v6 = vld [vmem:[#allocation7 + $0x6] sm:$0x3] }
 0x361   : > { %v1385_v24 = vmul.f32 %v2414_v61, %v1369_v27  ;;  %v3388_v27 = vrot.slane %v1434_v6, %v2899_v2 }
 0x362   : > { %2425 = vrcp.f32 %v1325_v50 }
 0x363   : > { %v2416_v12 = vpop.eup %2415  ;;  %v3342_v63 = vadd.f32 %v1385_v24, %v3181_v39 }
 0x364   : > { %v2418_v26 = vpop.eup %2417  ;;  %v1326_v38 = vadd.f32 1.0, %v2416_v12 }
 0x365   : > { %v1412_v55 = vpack.c.bf16 %v3342_v63, %v3339_v45  ;;  %v1386_v39 = vmul.f32 %v2418_v26, %v1370_v20 }
 0x366   : > { %2427 = vrcp.f32 %v1326_v38 }
 0x367   : > { %v2420_v56 = vpop.eup %2419  ;;  %1599 = vmatmul.mubr.bf16.gmra.mxu1 %v1412_v55  ;;  %v3354_v53 = vadd.f32 %v1386_v39, %v3193_v8  ;;  %v1262_v8 = vmax.f32 %v1240_v58, 0.0 }
 0x368   : > { %v2422_v60 = vpop.eup %2421  ;;  %v1327_v29 = vadd.f32 1.0, %v2420_v56  ;;  %1608 = vmatprep.mubr.bf16.mxu1 %v2652_v0 }
 0x369   : > { %v1387_v3 = vmul.f32 %v2422_v60, %v1371_v43  ;;  %v1374_v32 = vsub.f32 %v1262_v8, %v3219_v40 }
 0x36a   : > { %2429 = vrcp.f32 %v1327_v29  ;;  %v3400_v29 = vrot.slane %v1434_v6, %v2913_v42 }
 0x36b   : > { %v2424_v54 = vpop.eup %2423  ;;  %v3357_v41 = vadd.f32 %v1387_v3, %v3196_v49 }
 0x36c   : > { %v1388_v25 = vmul.f32 %v2424_v54, %v1372_v30 }
 0x36d   : > { %v1413_v13 = vpack.c.bf16 %v3357_v41, %v3354_v53 }
 0x36e   : > { %v3369_v15 = vadd.f32 %v1388_v25, %v3208_v37 }
 0x36f   : > { %v2426_v48 = vpop.eup %2425  ;;  %1609 = vmatmul.mubr.bf16.gmra.mxu1 %v1413_v13 }
 0x370   : > { %1618 = vmatprep.mubr.bf16.mxu1 %v2652_v0  ;;  %v1389_v49 = vmul.f32 %v2426_v48, %v1373_v28 }
 0x372   : > { %v3372_v47 = vadd.f32 %v1389_v49, %v3211_v51 }
 0x373   : > { %v2428_v34 = vpop.eup %2427 }
 0x374   : > { %v1414_v21 = vpack.c.bf16 %v3372_v47, %v3369_v15  ;;  %v1390_v59 = vmul.f32 %v2428_v34, %v1374_v32 }
 0x376   : > { %v3380_v37 = vadd.f32 %v1390_v59, %v3219_v40 }
 0x377   : > { %v2430_v7 = vpop.eup %2429  ;;  %1619 = vmatmul.mubr.bf16.gmra.mxu1 %v1414_v21 }
 0x378   : > { %1628 = vmatprep.mubr.bf16.mxu1 %v2652_v0  ;;  %v1391_v17 = vmul.f32 %v2430_v7, %v1375_v36 }
 0x37a   : > { %v3383_v51 = vadd.f32 %v1391_v17, %v3222_v44 }
 0x37c   : > { %v1415_v9 = vpack.c.bf16 %v3383_v51, %v3380_v37 }
 0x37f   : > { %1629 = vmatmul.mubr.bf16.gmra.mxu1 %v1415_v9 }
 0x404   : > { %v1560_v46 = vpop.f32.mrf.mxu1 }
 0x405   : > { %v1561_v28 = vadd.f32 %v1560_v46, %v3400_v29 }
 0x406   : > { %v1562_v23 = vpop.f32.mrf.mxu1 }
 0x407   : > { %v1563_v61 = vadd.f32 %v1562_v23, %v3388_v27  ;;  %v1639_v34 = vmax.f32 %v1561_v28, 0.0 }
 0x408   : > { %v1564_v0 = vpop.f32.mrf.mxu1 }
 0x409   : > { %v2046_v50 = vmul.f32 -1.442695, %v1563_v61  ;;  %v1565_v49 = vadd.f32 %v1564_v0, %v3400_v29  ;;  %v1751_v6 = vsub.f32 %v1639_v34, %v3263_v31 }
 0x40a   : > { %v1566_v19 = vpop.f32.mrf.mxu1 }
 0x40b   : > { %2431 = vpow2.f32 %v2046_v50  ;;  %v1567_v40 = vadd.f32 %v1566_v19, %v3388_v27  ;;  %v1640_v7 = vmax.f32 %v1565_v49, 0.0 }
 0x40c   : > { %v1570_v44 = vpop.f32.mrf.mxu1 }
 0x40d   : > { %v2047_v24 = vmul.f32 -1.442695, %v1567_v40  ;;  %v1571_v46 = vadd.f32 %v1570_v44, %v3400_v29  ;;  %v1752_v40 = vsub.f32 %v1640_v7, %v3266_v10 }
 0x40e   : > { %v1572_v12 = vpop.f32.mrf.mxu1 }
 0x40f   : > { %2433 = vpow2.f32 %v2047_v24  ;;  %v1573_v11 = vadd.f32 %v1572_v12, %v3388_v27 }
 0x410   : > { %v1574_v26 = vpop.f32.mrf.mxu1 }
 0x411   : > { %v2048_v4 = vmul.f32 -1.442695, %v1573_v11 }
 0x412   : > { %v1576_v2 = vpop.f32.mrf.mxu1 }
 0x413   : > { %2435 = vpow2.f32 %v2048_v4  ;;  %v1577_v38 = vadd.f32 %v1576_v2, %v3388_v27  ;;  %v1641_v4 = vmax.f32 %v1571_v46, 0.0  ;;  %v1575_v2 = vadd.f32 %v1574_v26, %v3400_v29 }
 0x415   : > { %v2049_v20 = vmul.f32 -1.442695, %v1577_v38  ;;  %v3394_v55 = vpop.f32.mrf.mxu1 }
 0x417   : > { %2437 = vpow2.f32 %v2049_v20  ;;  %v1582_v52 = vpop.f32.mrf.mxu1 }
 0x418   : > { %v2432_v56 = vpop.eup %2431  ;;  %v1583_v43 = vadd.f32 %v1582_v52, %v3388_v27 }
 0x419   : > { %v1703_v39 = vadd.f32 1.0, %v2432_v56  ;;  %v3397_v60 = vpop.f32.mrf.mxu1 }
 0x41a   : > { %v2050_v1 = vmul.f32 -1.442695, %v1583_v43 }
 0x41b   : > { %2439 = vrcp.f32 %v1703_v39  ;;  %v1586_v3 = vpop.f32.mrf.mxu1 }
 0x41c   : > { %v2434_v62 = vpop.eup %2433  ;;  %2441 = vpow2.f32 %v2050_v1  ;;  %v1587_v54 = vadd.f32 %v1586_v3, %v3388_v27  ;;  %v1753_v1 = vsub.f32 %v1641_v4, %v3284_v33  ;;  %v1642_v3 = vmax.f32 %v1575_v2, 0.0 }
 0x41d   : > { %v1704_v30 = vadd.f32 1.0, %v2434_v62 }
 0x41e   : > { %v3403_v58 = vpop.f32.mrf.mxu1  ;;  %v2051_v13 = vmul.f32 -1.442695, %v1587_v54  ;;  %v1754_v49 = vsub.f32 %v1642_v3, %v3287_v18 }
 0x41f   : > { %2443 = vrcp.f32 %v1704_v30  ;;  %v1581_v30 = vadd.f32 %v3394_v55, %v3400_v29  ;;  %v1585_v55 = vadd.f32 %v3397_v60, %v3400_v29  ;;  %v1591_v60 = vadd.f32 %v3403_v58, %v3400_v29 }
 0x420   : > { %v1592_v5 = vpop.f32.mrf.mxu1  ;;  %v2436_v25 = vpop.eup %2435  ;;  %2445 = vpow2.f32 %v2051_v13 }
 0x421   : > { %v1593_v48 = vadd.f32 %v1592_v5, %v3388_v27  ;;  %v1705_v42 = vadd.f32 1.0, %v2436_v25 }
 0x422   : > { %v3407_v8 = vpop.f32.mrf.mxu1 }
 0x423   : > { %v2052_v14 = vmul.f32 -1.442695, %v1593_v48  ;;  %2447 = vrcp.f32 %v1705_v42  ;;  %v1595_v58 = vadd.f32 %v3407_v8, %v3400_v29 }
 0x424   : > { %v1596_v32 = vpop.f32.mrf.mxu1  ;;  %v2438_v21 = vpop.eup %2437 }
 0x425   : > { %2449 = vpow2.f32 %v2052_v14  ;;  %v1597_v36 = vadd.f32 %v1596_v32, %v3388_v27  ;;  %v1706_v59 = vadd.f32 1.0, %v2438_v21  ;;  %v1643_v32 = vmax.f32 %v1581_v30, 0.0 }
 0x427   : > { %v2053_v17 = vmul.f32 -1.442695, %v1597_v36  ;;  %v3411_v9 = vpop.f32.mrf.mxu1  ;;  %2451 = vrcp.f32 %v1706_v59 }
 0x428   : > { %v2440_v23 = vpop.eup %2439 }
 0x429   : > { %2453 = vpow2.f32 %v2053_v17  ;;  %v1602_v61 = vpop.f32.mrf.mxu1  ;;  %v2442_v0 = vpop.eup %2441  ;;  %v1767_v50 = vmul.f32 %v2440_v23, %v1751_v6  ;;  %v1755_v23 = vsub.f32 %v1643_v32, %v3306_v35 }
 0x42a   : > { %v1603_v19 = vadd.f32 %v1602_v61, %v3388_v27  ;;  %v1707_v24 = vadd.f32 1.0, %v2442_v0  ;;  %v1644_v61 = vmax.f32 %v1585_v55, 0.0 }
 0x42b   : > { %v3417_v12 = vpop.f32.mrf.mxu1  ;;  %v1783_v11 = vadd.f32 %v1767_v50, %v3263_v31 }
 0x42c   : > { %v2054_v44 = vmul.f32 -1.442695, %v1603_v19  ;;  %v2444_v38 = vpop.eup %2443  ;;  %2455 = vrcp.f32 %v1707_v24 }
 0x42d   : > { %v1606_v20 = vpop.f32.mrf.mxu1  ;;  %v2446_v52 = vpop.eup %2445  ;;  %1799 = vst [vmem:[%s3423_s18] sm:$0xff] %v1783_v11  ;;  %v1768_v56 = vmul.f32 %v2444_v38, %v1752_v40  ;;  %v1645_v38 = vmax.f32 %v1591_v60, 0.0 }
 0x42e   : > { %2457 = vpow2.f32 %v2054_v44  ;;  %v1607_v43 = vadd.f32 %v1606_v20, %v3388_v27  ;;  %v1708_v39 = vadd.f32 1.0, %v2446_v52  ;;  %v1756_v44 = vsub.f32 %v1644_v61, %v3309_v16 }
 0x42f   : > { %v3427_v31 = vpop.f32.mrf.mxu1  ;;  %v1784_v26 = vadd.f32 %v1768_v56, %v3266_v10 }
 0x430   : > { %v2055_v62 = vmul.f32 -1.442695, %v1607_v43  ;;  %v2448_v54 = vpop.eup %2447  ;;  %2459 = vrcp.f32 %v1708_v39 }
 0x431   : > { %v1612_v13 = vpop.f32.mrf.mxu1  ;;  %1800 = vst [vmem:[%s3423_s18 + $0x8] sm:$0xff] %v1784_v26  ;;  %v1769_v5 = vmul.f32 %v2448_v54, %v1753_v1  ;;  %v1646_v54 = vmax.f32 %v1595_v58, 0.0 }
 0x432   : > { %v2450_v28 = vpop.eup %2449  ;;  %2461 = vpow2.f32 %v2055_v62  ;;  %v1613_v25 = vadd.f32 %v1612_v13, %v3388_v27  ;;  %v1757_v62 = vsub.f32 %v1645_v38, %v3324_v22  ;;  %v1601_v13 = vadd.f32 %v3411_v9, %v3400_v29 }
 0x433   : > { %v1709_v48 = vadd.f32 1.0, %v2450_v28  ;;  %v3435_v42 = vpop.f32.mrf.mxu1  ;;  %v1785_v10 = vadd.f32 %v1769_v5, %v3284_v33  ;;  %v1605_v9 = vadd.f32 %v3417_v12, %v3400_v29 }
 0x434   : > { %v2056_v14 = vmul.f32 -1.442695, %v1613_v25  ;;  %v2452_v34 = vpop.eup %2451  ;;  %v1647_v55 = vmax.f32 %v1601_v13, 0.0 }
 0x435   : > { %2463 = vrcp.f32 %v1709_v48  ;;  %v1616_v21 = vpop.f32.mrf.mxu1  ;;  %1801 = vst [vmem:[%s3423_s18 + $0x10] sm:$0xff] %v1785_v10  ;;  %v1770_v59 = vmul.f32 %v2452_v34, %v1754_v49 }
 0x436   : > { %v2454_v36 = vpop.eup %2453  ;;  %2465 = vpow2.f32 %v2056_v14  ;;  %v1617_v7 = vadd.f32 %v1616_v21, %v3388_v27  ;;  %v1758_v14 = vsub.f32 %v1646_v54, %v3327_v57 }
 0x437   : > { %v1710_v17 = vadd.f32 1.0, %v2454_v36  ;;  %v3443_v6 = vpop.f32.mrf.mxu1  ;;  %v1786_v33 = vadd.f32 %v1770_v59, %v3287_v18 }
 0x438   : > { %v2057_v46 = vmul.f32 -1.442695, %v1617_v7  ;;  %v1621_v38 = vadd.f32 %v3443_v6, %v3400_v29 }
 0x439   : > { %2467 = vrcp.f32 %v1710_v17  ;;  %v1622_v0 = vpop.f32.mrf.mxu1  ;;  %v2456_v50 = vpop.eup %2455  ;;  %1802 = vst [vmem:[%s3423_s18 + $0x18] sm:$0xff] %v1786_v33  ;;  %v1759_v33 = vsub.f32 %v1647_v55, %v3339_v45 }
 0x43a   : > { %2469 = vpow2.f32 %v2057_v46  ;;  %v1623_v19 = vadd.f32 %v1622_v0, %v3388_v27  ;;  %v1771_v24 = vmul.f32 %v2456_v50, %v1755_v23  ;;  %v1648_v46 = vmax.f32 %v1605_v9, 0.0 }
 0x43b   : > { %v2458_v40 = vpop.eup %2457  ;;  %v3451_v11 = vpop.f32.mrf.mxu1  ;;  %v1611_v23 = vadd.f32 %v3427_v31, %v3400_v29 }
 0x43c   : > { %v1711_v18 = vadd.f32 1.0, %v2458_v40  ;;  %v2058_v4 = vmul.f32 -1.442695, %v1623_v19  ;;  %v1787_v2 = vadd.f32 %v1771_v24, %v3306_v35  ;;  %v1760_v50 = vsub.f32 %v1648_v46, %v3342_v63 }
 0x43d   : > { %v1626_v20 = vpop.f32.mrf.mxu1  ;;  %v2460_v52 = vpop.eup %2459  ;;  %v1615_v19 = vadd.f32 %v3435_v42, %v3400_v29 }
 0x43e   : > { %2471 = vrcp.f32 %v1711_v18  ;;  %v1627_v56 = vadd.f32 %v1626_v20, %v3388_v27  ;;  %1803 = vst [vmem:[%s3423_s18 + $0x20] sm:$0xff] %v1787_v2  ;;  %v1772_v39 = vmul.f32 %v2460_v52, %v1756_v44 }
 0x43f   : > { %v2462_v43 = vpop.eup %2461  ;;  %2473 = vpow2.f32 %v2058_v4  ;;  %v3459_v26 = vpop.f32.mrf.mxu1  ;;  %v1650_v44 = vmax.f32 %v1615_v19, 0.0 }
 0x440   : > { %v1712_v1 = vadd.f32 1.0, %v2462_v43  ;;  %v2059_v35 = vmul.f32 -1.442695, %v1627_v56  ;;  %v1788_v3 = vadd.f32 %v1772_v39, %v3309_v16  ;;  %v1625_v39 = vadd.f32 %v3451_v11, %v3400_v29 }
 0x441   : > { %v1632_v8 = vpop.f32.mrf.mxu1  ;;  %v1762_v56 = vsub.f32 %v1650_v44, %v3357_v41 }
 0x442   : > { %v2464_v30 = vpop.eup %2463  ;;  %2475 = vrcp.f32 %v1712_v1  ;;  %v1633_v28 = vadd.f32 %v1632_v8, %v3388_v27  ;;  %1804 = vst [vmem:[%s3423_s18 + $0x28] sm:$0xff] %v1788_v3  ;;  %v1652_v54 = vmax.f32 %v1625_v39, 0.0 }
 0x443   : > { %v2466_v5 = vpop.eup %2465  ;;  %v1773_v25 = vmul.f32 %v2464_v30, %v1757_v62  ;;  %2477 = vpow2.f32 %v2059_v35  ;;  %v3467_v48 = vpop.f32.mrf.mxu1 }
 0x444   : > { %v1713_v10 = vadd.f32 1.0, %v2466_v5  ;;  %v2060_v16 = vmul.f32 -1.442695, %v1633_v28  ;;  %v1764_v13 = vsub.f32 %v1652_v54, %v3372_v47 }
 0x445   : > { %v1789_v49 = vadd.f32 %v1773_v25, %v3324_v22  ;;  %v1636_v34 = vpop.f32.mrf.mxu1 }
 0x446   : > { %v2468_v32 = vpop.eup %2467  ;;  %2479 = vrcp.f32 %v1713_v10  ;;  %v1637_v21 = vadd.f32 %v1636_v34, %v3388_v27 }
 0x447   : > { %v2470_v36 = vpop.eup %2469  ;;  %1805 = vst [vmem:[%s3423_s18 + $0x30] sm:$0xff] %v1789_v49  ;;  %v1774_v59 = vmul.f32 %v2468_v32, %v1758_v14  ;;  %2481 = vpow2.f32 %v2060_v16 }
 0x448   : > { %v1714_v7 = vadd.f32 1.0, %v2470_v36  ;;  %v2061_v17 = vmul.f32 -1.442695, %v1637_v21 }
 0x449   : > { %v1790_v22 = vadd.f32 %v1774_v59, %v3327_v57  ;;  %v1649_v57 = vmax.f32 %v1611_v23, 0.0 }
 0x44a   : > { %2483 = vrcp.f32 %v1714_v7 }
 0x44b   : > { %v2472_v12 = vpop.eup %2471  ;;  %1806 = vst [vmem:[%s3423_s18 + $0x38] sm:$0xff] %v1790_v22  ;;  %2485 = vpow2.f32 %v2061_v17  ;;  %v1761_v2 = vsub.f32 %v1649_v57, %v3354_v53 }
 0x44c   : > { %v2474_v27 = vpop.eup %2473  ;;  %v1775_v61 = vmul.f32 %v2472_v12, %v1759_v33 }
 0x44d   : > { %v1715_v60 = vadd.f32 1.0, %v2474_v27 }
 0x44e   : > { %v1791_v0 = vadd.f32 %v1775_v61, %v3339_v45 }
 0x44f   : > { %v2476_v40 = vpop.eup %2475  ;;  %2487 = vrcp.f32 %v1715_v60 }
 0x450   : > { %v2478_v24 = vpop.eup %2477  ;;  %1807 = vst [vmem:[%s3423_s18 + $0x40] sm:$0xff] %v1791_v0  ;;  %v1776_v31 = vmul.f32 %v2476_v40, %v1760_v50 }
 0x451   : > { %v1716_v18 = vadd.f32 1.0, %v2478_v24 }
 0x452   : > { %v1792_v4 = vadd.f32 %v1776_v31, %v3342_v63  ;;  %v1651_v63 = vmax.f32 %v1621_v38, 0.0 }
 0x453   : > { %v2480_v45 = vpop.eup %2479  ;;  %2489 = vrcp.f32 %v1716_v18 }
 0x454   : > { %v2482_v58 = vpop.eup %2481  ;;  %1808 = vst [vmem:[%s3423_s18 + $0x48] sm:$0xff] %v1792_v4  ;;  %v1777_v42 = vmul.f32 %v2480_v45, %v1761_v2  ;;  %v1763_v62 = vsub.f32 %v1651_v63, %v3369_v15 }
 0x455   : > { %v1717_v20 = vadd.f32 1.0, %v2482_v58 }
 0x456   : > { %v1793_v52 = vadd.f32 %v1777_v42, %v3354_v53  ;;  %v1631_v53 = vadd.f32 %v3459_v26, %v3400_v29 }
 0x457   : > { %v2484_v43 = vpop.eup %2483  ;;  %2491 = vrcp.f32 %v1717_v20 }
 0x458   : > { %v2486_v1 = vpop.eup %2485  ;;  %1809 = vst [vmem:[%s3423_s18 + $0x50] sm:$0xff] %v1793_v52  ;;  %v1778_v6 = vmul.f32 %v2484_v43, %v1762_v56  ;;  %v1653_v28 = vmax.f32 %v1631_v53, 0.0 }
 0x459   : > { %v1718_v35 = vadd.f32 1.0, %v2486_v1 }
 0x45a   : > { %v1794_v3 = vadd.f32 %v1778_v6, %v3357_v41  ;;  %v1635_v41 = vadd.f32 %v3467_v48, %v3400_v29  ;;  %v1765_v10 = vsub.f32 %v1653_v28, %v3380_v37 }
 0x45b   : > { %2493 = vrcp.f32 %v1718_v35 }
 0x45c   : > { %v2488_v8 = vpop.eup %2487  ;;  %1810 = vst [vmem:[%s3423_s18 + $0x58] sm:$0xff] %v1794_v3  ;;  %v1654_v16 = vmax.f32 %v1635_v41, 0.0 }
 0x45d   : > { %v1779_v30 = vmul.f32 %v2488_v8, %v1763_v62 }
 0x45e   : > { %v1766_v34 = vsub.f32 %v1654_v16, %v3383_v51 }
 0x45f   : > { %v1795_v11 = vadd.f32 %v1779_v30, %v3369_v15 }
 0x460   : > { %v2490_v5 = vpop.eup %2489 }
 0x461   : > { %1811 = vst [vmem:[%s3423_s18 + $0x60] sm:$0xff] %v1795_v11  ;;  %v1780_v25 = vmul.f32 %v2490_v5, %v1764_v13 }
 0x463   : > { %v1796_v26 = vadd.f32 %v1780_v25, %v3372_v47 }
 0x464   : > { %v2492_v49 = vpop.eup %2491 }
 0x465   : > { %1812 = vst [vmem:[%s3423_s18 + $0x68] sm:$0xff] %v1796_v26  ;;  %v1781_v15 = vmul.f32 %v2492_v49, %v1765_v10 }
 0x467   : > { %v1797_v14 = vadd.f32 %v1781_v15, %v3380_v37 }
 0x468   : > { %v2494_v29 = vpop.eup %2493 }
 0x469   : > { %1813 = vst [vmem:[%s3423_s18 + $0x70] sm:$0xff] %v1797_v14  ;;  %v1782_v48 = vmul.f32 %v2494_v29, %v1766_v34 }
 0x46b   : > { %v1798_v47 = vadd.f32 %v1782_v48, %v3383_v51 }
 0x46d   : > { %1814 = vst [vmem:[%s3423_s18 + $0x78] sm:$0xff] %v1798_v47 }
 0x46e   : > { %2588 = shalt.err (!%p2585_p3)
}
 0x46f   : > { %s2589_s22 = scalar_lea.hbm %s3516_s4, 2048  ;;  %s2593_s30 = scalar_lea.hbm %s3566_s3, 4096 }
 0x470   : > { %p2590_p11 = scmp.ne.s32.totalorder %s3516_s4, %s2589_s22  ;;  %p2594_p4 = scmp.lt.s32.totalorder %s3516_s4, %s3566_s3 }
 0x471   : > { %p2595_p6 = scmp.lt.s32.totalorder %s2593_s30, %s2589_s22 }
 0x472   : > { %p2591_p9 = pnand %p2590_p11, %p3581_p2 }
 0x473   : > { %p2596_p8 = por %p2595_p6, %p2594_p4 }
 0x474   : > { %p2592_p1 = pneg %p2591_p9 }
 0x476   : > { %p2597_p10 = pnand %p2596_p8, %p2592_p1 }
 0x478   : > { %2600 = shalt.err (!%p2597_p10)
}
 0x479   : > { %s2654_s5 = smov 128   ;;  %s2655_s18 = smov 8  }
 0x47a   : > { %2079 = dma.vmem_to_hbm [thread:$0]  (%p3581_p2), %s3518_s27, 2048, %s3516_s4, %s1816_s6, %s2654_s5, %s2654_s5, %s2655_s18  }
 0x47b PF: > { %s1844_s20 = sand.u32 1, %s2631_s12   ;;  %p3582_p7 = scmp.ne.s32.totalorder %s3572_s19, 0 }
 0x47c   : > { %p3583_p12 = scmp.ge.s32.totalorder %s2643_s15, 2  ;;  %s1845_s28 = scalar_lea.sflag [#allocation4], %s1844_s20 }
 0x47e   : > { %p2093_p13 = pnand %p3583_p12, %p3582_p7 }
 0x480   : > { %p2094_p0 = pneg %p2093_p13 }
 0x482   : > { %2626 = dma.done.wait (%p2094_p0), %s1845_s28, 2048  }
 0x483   : > { %2628 = vsyncadd (%p2094_p0), %s1845_s28, 4294965248  ;;  %p17_p5 = scmp.ge.s32.totalorder %s2751_s9, 4   ;;  %s3584_s12 = smov %s2635_s13 }
 0x484   : > { %s3585_s13 = smov %s2639_s14  ;;  %s3586_s14 = smov %s2760_s17 }
 0x485   : > { %s3587_s15 = smov %s2751_s9  ;;  %19 = sbr.rel (!%p17_p5) target bundleno = 6 (0x6), region = 91 }
 0x48a   :  { %1850 = vsyncpa [#allocation3], 1 }
 0x48b   :  { %1852 = vsyncpa [#allocation3 + $0x1], 1 }
 0x48c   :  { %1853 = vsyncpa [#allocation6], 1 }
 0x48d   :  { %1854 = vsyncpa [#allocation4], 1 }
 0x48e   :  { %1856 = vsyncpa [#allocation4 + $0x1], 1 }

</bundles_post_ra>
